<compile_context>
chip_gen: v6e
topology: v6e:2x2x1
jax: 0.10.0
libtpu: 0.0.40
codegen_flags: <defaults>
</compile_context>

<pallas_src>
import functools

import numpy as np

import jax
import jax.numpy as jnp
from jax.experimental import pallas as pl
from jax.experimental.pallas import tpu as pltpu


def _decoder3_fused_kernel(x_ref, m_ref, w1_ref, p1_ref, w2_ref, p2_ref,
                           w3_ref, p3_ref, o_ref, *, W, L):
    """Fused 3x (conv3x3 + bias + ReLU + folded BN) for one batch slab.

    x_ref : (Cin0, L)        input slab; lanes = images_per_slab*H*W, image-major (p = n*H*W + h*W + w)
    m_ref : (9, L)           per-tap validity masks, tiled per image (zero padding / roll-wrap masking)
    wK_ref: (9, CoutK, CinK) conv weights, tap-major -> each tap is a cheap leading-axis load
    pK_ref: (CoutK, 3)       packed [conv_bias, bn_scale, bn_shift] per output channel
    o_ref : (Cout3, L)
    """
    # Hoist the 8 boundary-tap mask loads out of the per-layer code (reused by all three layers).
    tap_masks = {kh * 3 + kw: m_ref[kh * 3 + kw: kh * 3 + kw + 1, :]
                 for kh in range(3) for kw in range(3) if not (kh == 1 and kw == 1)}

    def conv3x3_relu_bn(act, w_ref, p_ref, *, apply_scale):
        # act: (Cin, L) f32.  9 accumulated per-tap MXU matmuls; center tap + conv bias init the acc.
        acc = jnp.dot(w_ref[4], act, preferred_element_type=jnp.float32) + p_ref[:, 0:1]
        for kh in range(3):
            for kw in range(3):
                if kh == 1 and kw == 1:
                    continue
                t = kh * 3 + kw
                d = (kh - 1) * W + (kw - 1)                 # static shift in flattened lane space
                shifted = pltpu.roll(act, shift=(-d) % L, axis=1)
                # Mask AFTER the matmul: the mask broadcasts over the contracted channel dim, so
                # masking (Cout, L) is equivalent to masking (Cin, L) and cheaper when Cin > Cout.
                acc = acc + jnp.dot(w_ref[t], shifted,
                                    preferred_element_type=jnp.float32) * tap_masks[t]
        acc = jnp.maximum(acc, 0.0)                         # ReLU
        # TODO(synk): Dropout(p=0.6) is identity in eval/inference mode; training-mode masking not implemented.
        if apply_scale:
            return acc * p_ref[:, 1:2] + p_ref[:, 2:3]      # last layer: explicit BN(eval) affine
        return acc + p_ref[:, 2:3]                          # BN scale already folded into next layer's W

    a = x_ref[...].astype(jnp.float32)                      # (Cin0, L)
    a = conv3x3_relu_bn(a, w1_ref, p1_ref, apply_scale=False)   # intermediates never touch HBM
    a = conv3x3_relu_bn(a, w2_ref, p2_ref, apply_scale=False)
    a = conv3x3_relu_bn(a, w3_ref, p3_ref, apply_scale=True)
    o_ref[...] = a.astype(o_ref.dtype)                      # lane-dense, unmasked stores


def _make_tap_masks(H, W, images_per_slab):
    """(9, images_per_slab*H*W) f32 masks: 1 where the shifted neighbor (h+dh, w+dw) is in-bounds.

    Tiled per image so pltpu.roll wrapping across image boundaries (batch folded into lanes) is
    zeroed exactly like conv zero padding."""
    HW = H * W
    rows = np.arange(HW) // W
    cols = np.arange(HW) % W
    masks = np.zeros((9, HW), np.float32)
    for kh in range(3):
        for kw in range(3):
            dh, dw = kh - 1, kw - 1
            valid = (rows + dh >= 0) & (rows + dh < H) & (cols + dw >= 0) & (cols + dw < W)
            masks[kh * 3 + kw] = valid.astype(np.float32)
    return jnp.asarray(np.tile(masks, (1, images_per_slab)))


def prepare_params(raw_params, eps=1e-5):
    """Fold conv + BN(eval) params for the fused kernel.

    scale_k = gamma/sqrt(var+eps), shift_k = beta - mean*scale_k.  scale_k of all but the last
    layer is folded into the NEXT layer's weight input-channel columns; the kernel then only adds
    shift_k/scale_k after ReLU (the shift must stay explicit so zero padding still sees zeros).
    Weights are returned tap-major (9, Cout, Cin)."""
    scales, shifts, biases, weights = [], [], [], []
    for (w_hwio, b, gamma, beta, mean, var) in raw_params:
        s = gamma / jnp.sqrt(var + eps)
        scales.append(s)
        shifts.append(beta - mean * s)
        biases.append(b)
        weights.append(w_hwio)

    prepared = []
    n = len(raw_params)
    for k in range(n):
        w = weights[k]                                      # (3, 3, Cin, Cout)
        _, _, cin, cout = w.shape
        if k > 0:                                           # fold previous layer's BN scale
            w = w * scales[k - 1][None, None, :, None]
        w_tap = jnp.transpose(w.reshape(9, cin, cout), (0, 2, 1))   # (9, Cout, Cin)
        if k < n - 1:
            p = jnp.stack([biases[k], jnp.ones_like(scales[k]), shifts[k] / scales[k]], axis=1)
        else:
            p = jnp.stack([biases[k], scales[k], shifts[k]], axis=1)
        prepared.append((w_tap.astype(jnp.float32), p.astype(jnp.float32)))
    return tuple(prepared)


def default_num_slabs(batch):
    """2 slabs on dual-TensorCore chips (v7x) so both cores get half the batch; 1 otherwise."""
    try:
        kind = jax.devices()[0].device_kind.lower()
    except Exception:
        kind = ""
    return 2 if ("v7" in kind and batch >= 2 and batch % 2 == 0) else 1


@functools.partial(jax.jit, static_argnames=("num_slabs",))
def decoder_layer3_forward(x_nchw, params, num_slabs=1):
    (w1, p1), (w2, p2), (w3, p3) = params
    N, cin0, H, W = x_nchw.shape
    HW = H * W
    if N % num_slabs != 0:
        num_slabs = 1
    imgs_per_slab = N // num_slabs
    L = imgs_per_slab * HW
    c1, c2, c3 = w1.shape[1], w2.shape[1], w3.shape[1]

    # Fold the batch into the lane dimension: (N, C, H, W) -> (C, N*H*W).  Tiny wrapper transpose.
    x_cl = jnp.transpose(x_nchw, (1, 0, 2, 3)).reshape(cin0, N * HW)
    masks = _make_tap_masks(H, W, imgs_per_slab)            # (9, L)

    kernel = functools.partial(_decoder3_fused_kernel, W=W, L=L)
    out_cl = pl.pallas_call(
        kernel,
        out_shape=jax.ShapeDtypeStruct((c3, N * HW), x_nchw.dtype),
        grid=(num_slabs,),
        in_specs=[
            pl.BlockSpec((cin0, L), lambda s: (0, s)),      # input slab (lane block s)
            pl.BlockSpec((9, L), lambda s: (0, 0)),         # per-tap masks (shared by all slabs)
            pl.BlockSpec((9, c1, cin0), lambda s: (0, 0, 0)),
            pl.BlockSpec((c1, 3), lambda s: (0, 0)),
            pl.BlockSpec((9, c2, c1), lambda s: (0, 0, 0)),
            pl.BlockSpec((c2, 3), lambda s: (0, 0)),
            pl.BlockSpec((9, c3, c2), lambda s: (0, 0, 0)),
            pl.BlockSpec((c3, 3), lambda s: (0, 0)),
        ],
        out_specs=pl.BlockSpec((c3, L), lambda s: (0, s)),
        compiler_params=pltpu.CompilerParams(dimension_semantics=("parallel",)),
    )(x_cl, masks, w1, p1, w2, p2, w3, p3)
    return jnp.transpose(out_cl.reshape(c3, N, H, W), (1, 0, 2, 3))


def init_raw_params(key, in_channels, out_channels):
    """Deterministic synthetic parameters matching decoder_layer3's shapes (conv weights in HWIO)."""
    chans = [(in_channels * 2, in_channels),
             (in_channels, in_channels),
             (in_channels, out_channels)]
    raw = []
    for i, (cin, cout) in enumerate(chans):
        ks = jax.random.split(jax.random.fold_in(key, i), 6)
        w = jax.random.normal(ks[0], (3, 3, cin, cout), jnp.float32) * 0.1
        b = jax.random.normal(ks[1], (cout,), jnp.float32) * 0.05
        gamma = 1.0 + 0.1 * jax.random.normal(ks[2], (cout,), jnp.float32)
        beta = 0.1 * jax.random.normal(ks[3], (cout,), jnp.float32)
        mean = 0.1 * jax.random.normal(ks[4], (cout,), jnp.float32)
        var = 1.0 + 0.1 * jax.random.uniform(ks[5], (cout,), jnp.float32)
        raw.append((w, b, gamma, beta, mean, var))
    return raw


def reference_forward(x_nchw, raw_params, eps=1e-5):
    """Pure-JAX reference (conv -> bias -> ReLU -> BN eval -> dropout identity) x3."""
    x = x_nchw
    for (w, b, g, bt, m, v) in raw_params:
        y = jax.lax.conv_general_dilated(
            x, w, window_strides=(1, 1), padding=((1, 1), (1, 1)),
            dimension_numbers=("NCHW", "HWIO", "NCHW"))
        scale = g / jnp.sqrt(v + eps)
        shift = bt - m * scale
        y = jnp.maximum(y + b[None, :, None, None], 0.0)
        x = y * scale[None, :, None, None] + shift[None, :, None, None]
    return x


if __name__ == "__main__":
    in_channels, out_channels = 4, 4
    N, H, W = 2, 16, 16

    key = jax.random.PRNGKey(0)
    k_x, k_p = jax.random.split(key)
    x = jax.random.normal(k_x, (N, in_channels * 2, H, W), jnp.float32)   # NCHW, like PyTorch
    raw_params = init_raw_params(k_p, in_channels, out_channels)
    params = prepare_params(raw_params)

    num_slabs = default_num_slabs(N)                        # 2 on v7x (2 TCs), 1 on v5e/v6e
    out = decoder_layer3_forward(x, params, num_slabs=num_slabs)
    out = jax.block_until_ready(out)
    assert out.shape == (N, out_channels, H, W)
    assert out.dtype == jnp.float32

    ref = reference_forward(x, raw_params)
    max_err = float(jnp.max(jnp.abs(out - ref)))
    assert jnp.allclose(out, ref, rtol=1e-4, atol=1e-4), f"max abs err {max_err}"
    print("KERNEL_OK")
</pallas_src>

<mosaic_0001>
module attributes {stable_mosaic.version = 11 : i64} {
  func.func @_decoder3_fused_kernel(%arg0: i32, %arg1: memref<8x512xf32, #tpu.memory_space<vmem>>, %arg2: memref<9x512xf32, #tpu.memory_space<vmem>>, %arg3: memref<9x4x8xf32, #tpu.memory_space<vmem>>, %arg4: memref<4x3xf32, #tpu.memory_space<vmem>>, %arg5: memref<9x4x4xf32, #tpu.memory_space<vmem>>, %arg6: memref<4x3xf32, #tpu.memory_space<vmem>>, %arg7: memref<9x4x4xf32, #tpu.memory_space<vmem>>, %arg8: memref<4x3xf32, #tpu.memory_space<vmem>>, %arg9: memref<4x512xf32, #tpu.memory_space<vmem>>) attributes {dimension_semantics = [#tpu.dimension_semantics<parallel>], iteration_bounds = array<i64: 1>, scalar_prefetch = 0 : i64, scratch_operands = 0 : i64, tpu.core_type = #tpu.core_type<tc>, window_params = [{transform_indices = @transform_0, window_bounds = array<i64: 8, 512>}, {pipeline_mode = #tpu.pipeline_mode<synchronous>, transform_indices = @transform_1, window_bounds = array<i64: 9, 512>}, {pipeline_mode = #tpu.pipeline_mode<synchronous>, transform_indices = @transform_2, window_bounds = array<i64: 9, 4, 8>}, {pipeline_mode = #tpu.pipeline_mode<synchronous>, transform_indices = @transform_3, window_bounds = array<i64: 4, 3>}, {pipeline_mode = #tpu.pipeline_mode<synchronous>, transform_indices = @transform_4, window_bounds = array<i64: 9, 4, 4>}, {pipeline_mode = #tpu.pipeline_mode<synchronous>, transform_indices = @transform_5, window_bounds = array<i64: 4, 3>}, {pipeline_mode = #tpu.pipeline_mode<synchronous>, transform_indices = @transform_6, window_bounds = array<i64: 9, 4, 4>}, {pipeline_mode = #tpu.pipeline_mode<synchronous>, transform_indices = @transform_7, window_bounds = array<i64: 4, 3>}, {transform_indices = @transform_8, window_bounds = array<i64: 4, 512>}]} {
    %c0 = arith.constant 0 : index
    %c0_0 = arith.constant 0 : index
    %0 = vector.load %arg2[%c0, %c0_0] : memref<9x512xf32, #tpu.memory_space<vmem>>, vector<1x512xf32>
    %c1 = arith.constant 1 : index
    %c0_1 = arith.constant 0 : index
    %1 = vector.load %arg2[%c1, %c0_1] : memref<9x512xf32, #tpu.memory_space<vmem>>, vector<1x512xf32>
    %c2 = arith.constant 2 : index
    %c0_2 = arith.constant 0 : index
    %2 = vector.load %arg2[%c2, %c0_2] : memref<9x512xf32, #tpu.memory_space<vmem>>, vector<1x512xf32>
    %c3 = arith.constant 3 : index
    %c0_3 = arith.constant 0 : index
    %3 = vector.load %arg2[%c3, %c0_3] : memref<9x512xf32, #tpu.memory_space<vmem>>, vector<1x512xf32>
    %c5 = arith.constant 5 : index
    %c0_4 = arith.constant 0 : index
    %4 = vector.load %arg2[%c5, %c0_4] : memref<9x512xf32, #tpu.memory_space<vmem>>, vector<1x512xf32>
    %c6 = arith.constant 6 : index
    %c0_5 = arith.constant 0 : index
    %5 = vector.load %arg2[%c6, %c0_5] : memref<9x512xf32, #tpu.memory_space<vmem>>, vector<1x512xf32>
    %c7 = arith.constant 7 : index
    %c0_6 = arith.constant 0 : index
    %6 = vector.load %arg2[%c7, %c0_6] : memref<9x512xf32, #tpu.memory_space<vmem>>, vector<1x512xf32>
    %c8 = arith.constant 8 : index
    %c0_7 = arith.constant 0 : index
    %7 = vector.load %arg2[%c8, %c0_7] : memref<9x512xf32, #tpu.memory_space<vmem>>, vector<1x512xf32>
    %c0_8 = arith.constant 0 : index
    %c0_9 = arith.constant 0 : index
    %8 = vector.load %arg1[%c0_8, %c0_9] : memref<8x512xf32, #tpu.memory_space<vmem>>, vector<8x512xf32>
    %c4 = arith.constant 4 : index
    %c0_10 = arith.constant 0 : index
    %c0_11 = arith.constant 0 : index
    %9 = vector.load %arg3[%c4, %c0_10, %c0_11] : memref<9x4x8xf32, #tpu.memory_space<vmem>>, vector<1x4x8xf32>
    %10 = vector.shape_cast %9 : vector<1x4x8xf32> to vector<4x8xf32>
    %cst = arith.constant dense<0.000000e+00> : vector<4x512xf32>
    %11 = tpu.matmul %10, %8, %cst {dimension_numbers = #tpu.dot_dimension_numbers<[1], [0], [0], [1], [0, 0, 1, 1], [], []>} : vector<4x8xf32>, vector<8x512xf32>, vector<4x512xf32> -> vector<4x512xf32>
    %c0_12 = arith.constant 0 : index
    %c0_13 = arith.constant 0 : index
    %12 = vector.load %arg4[%c0_12, %c0_13] : memref<4x3xf32, #tpu.memory_space<vmem>>, vector<4x1xf32>
    %13 = vector.broadcast %12 : vector<4x1xf32> to vector<4x512xf32>
    %14 = arith.addf %11, %13 : vector<4x512xf32>
    %c17_i32 = arith.constant 17 : i32
    %15 = tpu.dynamic_rotate %8 by %c17_i32 dim 1 : vector<8x512xf32>, i32 -> vector<8x512xf32>
    %c0_14 = arith.constant 0 : index
    %c0_15 = arith.constant 0 : index
    %c0_16 = arith.constant 0 : index
    %16 = vector.load %arg3[%c0_14, %c0_15, %c0_16] : memref<9x4x8xf32, #tpu.memory_space<vmem>>, vector<1x4x8xf32>
    %17 = vector.shape_cast %16 : vector<1x4x8xf32> to vector<4x8xf32>
    %cst_17 = arith.constant dense<0.000000e+00> : vector<4x512xf32>
    %18 = tpu.matmul %17, %15, %cst_17 {dimension_numbers = #tpu.dot_dimension_numbers<[1], [0], [0], [1], [0, 0, 1, 1], [], []>} : vector<4x8xf32>, vector<8x512xf32>, vector<4x512xf32> -> vector<4x512xf32>
    %19 = vector.broadcast %0 : vector<1x512xf32> to vector<4x512xf32>
    %20 = arith.mulf %18, %19 : vector<4x512xf32>
    %21 = arith.addf %14, %20 : vector<4x512xf32>
    %c16_i32 = arith.constant 16 : i32
    %22 = tpu.dynamic_rotate %8 by %c16_i32 dim 1 : vector<8x512xf32>, i32 -> vector<8x512xf32>
    %c1_18 = arith.constant 1 : index
    %c0_19 = arith.constant 0 : index
    %c0_20 = arith.constant 0 : index
    %23 = vector.load %arg3[%c1_18, %c0_19, %c0_20] : memref<9x4x8xf32, #tpu.memory_space<vmem>>, vector<1x4x8xf32>
    %24 = vector.shape_cast %23 : vector<1x4x8xf32> to vector<4x8xf32>
    %cst_21 = arith.constant dense<0.000000e+00> : vector<4x512xf32>
    %25 = tpu.matmul %24, %22, %cst_21 {dimension_numbers = #tpu.dot_dimension_numbers<[1], [0], [0], [1], [0, 0, 1, 1], [], []>} : vector<4x8xf32>, vector<8x512xf32>, vector<4x512xf32> -> vector<4x512xf32>
    %26 = vector.broadcast %1 : vector<1x512xf32> to vector<4x512xf32>
    %27 = arith.mulf %25, %26 : vector<4x512xf32>
    %28 = arith.addf %21, %27 : vector<4x512xf32>
    %c15_i32 = arith.constant 15 : i32
    %29 = tpu.dynamic_rotate %8 by %c15_i32 dim 1 : vector<8x512xf32>, i32 -> vector<8x512xf32>
    %c2_22 = arith.constant 2 : index
    %c0_23 = arith.constant 0 : index
    %c0_24 = arith.constant 0 : index
    %30 = vector.load %arg3[%c2_22, %c0_23, %c0_24] : memref<9x4x8xf32, #tpu.memory_space<vmem>>, vector<1x4x8xf32>
    %31 = vector.shape_cast %30 : vector<1x4x8xf32> to vector<4x8xf32>
    %cst_25 = arith.constant dense<0.000000e+00> : vector<4x512xf32>
    %32 = tpu.matmul %31, %29, %cst_25 {dimension_numbers = #tpu.dot_dimension_numbers<[1], [0], [0], [1], [0, 0, 1, 1], [], []>} : vector<4x8xf32>, vector<8x512xf32>, vector<4x512xf32> -> vector<4x512xf32>
    %33 = vector.broadcast %2 : vector<1x512xf32> to vector<4x512xf32>
    %34 = arith.mulf %32, %33 : vector<4x512xf32>
    %35 = arith.addf %28, %34 : vector<4x512xf32>
    %c1_i32 = arith.constant 1 : i32
    %36 = tpu.dynamic_rotate %8 by %c1_i32 dim 1 : vector<8x512xf32>, i32 -> vector<8x512xf32>
    %c3_26 = arith.constant 3 : index
    %c0_27 = arith.constant 0 : index
    %c0_28 = arith.constant 0 : index
    %37 = vector.load %arg3[%c3_26, %c0_27, %c0_28] : memref<9x4x8xf32, #tpu.memory_space<vmem>>, vector<1x4x8xf32>
    %38 = vector.shape_cast %37 : vector<1x4x8xf32> to vector<4x8xf32>
    %cst_29 = arith.constant dense<0.000000e+00> : vector<4x512xf32>
    %39 = tpu.matmul %38, %36, %cst_29 {dimension_numbers = #tpu.dot_dimension_numbers<[1], [0], [0], [1], [0, 0, 1, 1], [], []>} : vector<4x8xf32>, vector<8x512xf32>, vector<4x512xf32> -> vector<4x512xf32>
    %40 = vector.broadcast %3 : vector<1x512xf32> to vector<4x512xf32>
    %41 = arith.mulf %39, %40 : vector<4x512xf32>
    %42 = arith.addf %35, %41 : vector<4x512xf32>
    %c511_i32 = arith.constant 511 : i32
    %43 = tpu.dynamic_rotate %8 by %c511_i32 dim 1 : vector<8x512xf32>, i32 -> vector<8x512xf32>
    %c5_30 = arith.constant 5 : index
    %c0_31 = arith.constant 0 : index
    %c0_32 = arith.constant 0 : index
    %44 = vector.load %arg3[%c5_30, %c0_31, %c0_32] : memref<9x4x8xf32, #tpu.memory_space<vmem>>, vector<1x4x8xf32>
    %45 = vector.shape_cast %44 : vector<1x4x8xf32> to vector<4x8xf32>
    %cst_33 = arith.constant dense<0.000000e+00> : vector<4x512xf32>
    %46 = tpu.matmul %45, %43, %cst_33 {dimension_numbers = #tpu.dot_dimension_numbers<[1], [0], [0], [1], [0, 0, 1, 1], [], []>} : vector<4x8xf32>, vector<8x512xf32>, vector<4x512xf32> -> vector<4x512xf32>
    %47 = vector.broadcast %4 : vector<1x512xf32> to vector<4x512xf32>
    %48 = arith.mulf %46, %47 : vector<4x512xf32>
    %49 = arith.addf %42, %48 : vector<4x512xf32>
    %c497_i32 = arith.constant 497 : i32
    %50 = tpu.dynamic_rotate %8 by %c497_i32 dim 1 : vector<8x512xf32>, i32 -> vector<8x512xf32>
    %c6_34 = arith.constant 6 : index
    %c0_35 = arith.constant 0 : index
    %c0_36 = arith.constant 0 : index
    %51 = vector.load %arg3[%c6_34, %c0_35, %c0_36] : memref<9x4x8xf32, #tpu.memory_space<vmem>>, vector<1x4x8xf32>
    %52 = vector.shape_cast %51 : vector<1x4x8xf32> to vector<4x8xf32>
    %cst_37 = arith.constant dense<0.000000e+00> : vector<4x512xf32>
    %53 = tpu.matmul %52, %50, %cst_37 {dimension_numbers = #tpu.dot_dimension_numbers<[1], [0], [0], [1], [0, 0, 1, 1], [], []>} : vector<4x8xf32>, vector<8x512xf32>, vector<4x512xf32> -> vector<4x512xf32>
    %54 = vector.broadcast %5 : vector<1x512xf32> to vector<4x512xf32>
    %55 = arith.mulf %53, %54 : vector<4x512xf32>
    %56 = arith.addf %49, %55 : vector<4x512xf32>
    %c496_i32 = arith.constant 496 : i32
    %57 = tpu.dynamic_rotate %8 by %c496_i32 dim 1 : vector<8x512xf32>, i32 -> vector<8x512xf32>
    %c7_38 = arith.constant 7 : index
    %c0_39 = arith.constant 0 : index
    %c0_40 = arith.constant 0 : index
    %58 = vector.load %arg3[%c7_38, %c0_39, %c0_40] : memref<9x4x8xf32, #tpu.memory_space<vmem>>, vector<1x4x8xf32>
    %59 = vector.shape_cast %58 : vector<1x4x8xf32> to vector<4x8xf32>
    %cst_41 = arith.constant dense<0.000000e+00> : vector<4x512xf32>
    %60 = tpu.matmul %59, %57, %cst_41 {dimension_numbers = #tpu.dot_dimension_numbers<[1], [0], [0], [1], [0, 0, 1, 1], [], []>} : vector<4x8xf32>, vector<8x512xf32>, vector<4x512xf32> -> vector<4x512xf32>
    %61 = vector.broadcast %6 : vector<1x512xf32> to vector<4x512xf32>
    %62 = arith.mulf %60, %61 : vector<4x512xf32>
    %63 = arith.addf %56, %62 : vector<4x512xf32>
    %c495_i32 = arith.constant 495 : i32
    %64 = tpu.dynamic_rotate %8 by %c495_i32 dim 1 : vector<8x512xf32>, i32 -> vector<8x512xf32>
    %c8_42 = arith.constant 8 : index
    %c0_43 = arith.constant 0 : index
    %c0_44 = arith.constant 0 : index
    %65 = vector.load %arg3[%c8_42, %c0_43, %c0_44] : memref<9x4x8xf32, #tpu.memory_space<vmem>>, vector<1x4x8xf32>
    %66 = vector.shape_cast %65 : vector<1x4x8xf32> to vector<4x8xf32>
    %cst_45 = arith.constant dense<0.000000e+00> : vector<4x512xf32>
    %67 = tpu.matmul %66, %64, %cst_45 {dimension_numbers = #tpu.dot_dimension_numbers<[1], [0], [0], [1], [0, 0, 1, 1], [], []>} : vector<4x8xf32>, vector<8x512xf32>, vector<4x512xf32> -> vector<4x512xf32>
    %68 = vector.broadcast %7 : vector<1x512xf32> to vector<4x512xf32>
    %69 = arith.mulf %67, %68 : vector<4x512xf32>
    %70 = arith.addf %63, %69 : vector<4x512xf32>
    %cst_46 = arith.constant 0.000000e+00 : f32
    %71 = vector.broadcast %cst_46 : f32 to vector<4x512xf32>
    %72 = arith.maximumf %70, %71 : vector<4x512xf32>
    %c0_47 = arith.constant 0 : index
    %c2_48 = arith.constant 2 : index
    %73 = vector.load %arg4[%c0_47, %c2_48] : memref<4x3xf32, #tpu.memory_space<vmem>>, vector<4x1xf32>
    %74 = vector.broadcast %73 : vector<4x1xf32> to vector<4x512xf32>
    %75 = arith.addf %72, %74 : vector<4x512xf32>
    %c4_49 = arith.constant 4 : index
    %c0_50 = arith.constant 0 : index
    %c0_51 = arith.constant 0 : index
    %76 = vector.load %arg5[%c4_49, %c0_50, %c0_51] : memref<9x4x4xf32, #tpu.memory_space<vmem>>, vector<1x4x4xf32>
    %77 = vector.shape_cast %76 : vector<1x4x4xf32> to vector<4x4xf32>
    %cst_52 = arith.constant dense<0.000000e+00> : vector<4x512xf32>
    %78 = tpu.matmul %77, %75, %cst_52 {dimension_numbers = #tpu.dot_dimension_numbers<[1], [0], [0], [1], [0, 0, 1, 1], [], []>} : vector<4x4xf32>, vector<4x512xf32>, vector<4x512xf32> -> vector<4x512xf32>
    %c0_53 = arith.constant 0 : index
    %c0_54 = arith.constant 0 : index
    %79 = vector.load %arg6[%c0_53, %c0_54] : memref<4x3xf32, #tpu.memory_space<vmem>>, vector<4x1xf32>
    %80 = vector.broadcast %79 : vector<4x1xf32> to vector<4x512xf32>
    %81 = arith.addf %78, %80 : vector<4x512xf32>
    %c17_i32_55 = arith.constant 17 : i32
    %82 = tpu.dynamic_rotate %75 by %c17_i32_55 dim 1 : vector<4x512xf32>, i32 -> vector<4x512xf32>
    %c0_56 = arith.constant 0 : index
    %c0_57 = arith.constant 0 : index
    %c0_58 = arith.constant 0 : index
    %83 = vector.load %arg5[%c0_56, %c0_57, %c0_58] : memref<9x4x4xf32, #tpu.memory_space<vmem>>, vector<1x4x4xf32>
    %84 = vector.shape_cast %83 : vector<1x4x4xf32> to vector<4x4xf32>
    %cst_59 = arith.constant dense<0.000000e+00> : vector<4x512xf32>
    %85 = tpu.matmul %84, %82, %cst_59 {dimension_numbers = #tpu.dot_dimension_numbers<[1], [0], [0], [1], [0, 0, 1, 1], [], []>} : vector<4x4xf32>, vector<4x512xf32>, vector<4x512xf32> -> vector<4x512xf32>
    %86 = vector.broadcast %0 : vector<1x512xf32> to vector<4x512xf32>
    %87 = arith.mulf %85, %86 : vector<4x512xf32>
    %88 = arith.addf %81, %87 : vector<4x512xf32>
    %c16_i32_60 = arith.constant 16 : i32
    %89 = tpu.dynamic_rotate %75 by %c16_i32_60 dim 1 : vector<4x512xf32>, i32 -> vector<4x512xf32>
    %c1_61 = arith.constant 1 : index
    %c0_62 = arith.constant 0 : index
    %c0_63 = arith.constant 0 : index
    %90 = vector.load %arg5[%c1_61, %c0_62, %c0_63] : memref<9x4x4xf32, #tpu.memory_space<vmem>>, vector<1x4x4xf32>
    %91 = vector.shape_cast %90 : vector<1x4x4xf32> to vector<4x4xf32>
    %cst_64 = arith.constant dense<0.000000e+00> : vector<4x512xf32>
    %92 = tpu.matmul %91, %89, %cst_64 {dimension_numbers = #tpu.dot_dimension_numbers<[1], [0], [0], [1], [0, 0, 1, 1], [], []>} : vector<4x4xf32>, vector<4x512xf32>, vector<4x512xf32> -> vector<4x512xf32>
    %93 = vector.broadcast %1 : vector<1x512xf32> to vector<4x512xf32>
    %94 = arith.mulf %92, %93 : vector<4x512xf32>
    %95 = arith.addf %88, %94 : vector<4x512xf32>
    %c15_i32_65 = arith.constant 15 : i32
    %96 = tpu.dynamic_rotate %75 by %c15_i32_65 dim 1 : vector<4x512xf32>, i32 -> vector<4x512xf32>
    %c2_66 = arith.constant 2 : index
    %c0_67 = arith.constant 0 : index
    %c0_68 = arith.constant 0 : index
    %97 = vector.load %arg5[%c2_66, %c0_67, %c0_68] : memref<9x4x4xf32, #tpu.memory_space<vmem>>, vector<1x4x4xf32>
    %98 = vector.shape_cast %97 : vector<1x4x4xf32> to vector<4x4xf32>
    %cst_69 = arith.constant dense<0.000000e+00> : vector<4x512xf32>
    %99 = tpu.matmul %98, %96, %cst_69 {dimension_numbers = #tpu.dot_dimension_numbers<[1], [0], [0], [1], [0, 0, 1, 1], [], []>} : vector<4x4xf32>, vector<4x512xf32>, vector<4x512xf32> -> vector<4x512xf32>
    %100 = vector.broadcast %2 : vector<1x512xf32> to vector<4x512xf32>
    %101 = arith.mulf %99, %100 : vector<4x512xf32>
    %102 = arith.addf %95, %101 : vector<4x512xf32>
    %c1_i32_70 = arith.constant 1 : i32
    %103 = tpu.dynamic_rotate %75 by %c1_i32_70 dim 1 : vector<4x512xf32>, i32 -> vector<4x512xf32>
    %c3_71 = arith.constant 3 : index
    %c0_72 = arith.constant 0 : index
    %c0_73 = arith.constant 0 : index
    %104 = vector.load %arg5[%c3_71, %c0_72, %c0_73] : memref<9x4x4xf32, #tpu.memory_space<vmem>>, vector<1x4x4xf32>
    %105 = vector.shape_cast %104 : vector<1x4x4xf32> to vector<4x4xf32>
    %cst_74 = arith.constant dense<0.000000e+00> : vector<4x512xf32>
    %106 = tpu.matmul %105, %103, %cst_74 {dimension_numbers = #tpu.dot_dimension_numbers<[1], [0], [0], [1], [0, 0, 1, 1], [], []>} : vector<4x4xf32>, vector<4x512xf32>, vector<4x512xf32> -> vector<4x512xf32>
    %107 = vector.broadcast %3 : vector<1x512xf32> to vector<4x512xf32>
    %108 = arith.mulf %106, %107 : vector<4x512xf32>
    %109 = arith.addf %102, %108 : vector<4x512xf32>
    %c511_i32_75 = arith.constant 511 : i32
    %110 = tpu.dynamic_rotate %75 by %c511_i32_75 dim 1 : vector<4x512xf32>, i32 -> vector<4x512xf32>
    %c5_76 = arith.constant 5 : index
    %c0_77 = arith.constant 0 : index
    %c0_78 = arith.constant 0 : index
    %111 = vector.load %arg5[%c5_76, %c0_77, %c0_78] : memref<9x4x4xf32, #tpu.memory_space<vmem>>, vector<1x4x4xf32>
    %112 = vector.shape_cast %111 : vector<1x4x4xf32> to vector<4x4xf32>
    %cst_79 = arith.constant dense<0.000000e+00> : vector<4x512xf32>
    %113 = tpu.matmul %112, %110, %cst_79 {dimension_numbers = #tpu.dot_dimension_numbers<[1], [0], [0], [1], [0, 0, 1, 1], [], []>} : vector<4x4xf32>, vector<4x512xf32>, vector<4x512xf32> -> vector<4x512xf32>
    %114 = vector.broadcast %4 : vector<1x512xf32> to vector<4x512xf32>
    %115 = arith.mulf %113, %114 : vector<4x512xf32>
    %116 = arith.addf %109, %115 : vector<4x512xf32>
    %c497_i32_80 = arith.constant 497 : i32
    %117 = tpu.dynamic_rotate %75 by %c497_i32_80 dim 1 : vector<4x512xf32>, i32 -> vector<4x512xf32>
    %c6_81 = arith.constant 6 : index
    %c0_82 = arith.constant 0 : index
    %c0_83 = arith.constant 0 : index
    %118 = vector.load %arg5[%c6_81, %c0_82, %c0_83] : memref<9x4x4xf32, #tpu.memory_space<vmem>>, vector<1x4x4xf32>
    %119 = vector.shape_cast %118 : vector<1x4x4xf32> to vector<4x4xf32>
    %cst_84 = arith.constant dense<0.000000e+00> : vector<4x512xf32>
    %120 = tpu.matmul %119, %117, %cst_84 {dimension_numbers = #tpu.dot_dimension_numbers<[1], [0], [0], [1], [0, 0, 1, 1], [], []>} : vector<4x4xf32>, vector<4x512xf32>, vector<4x512xf32> -> vector<4x512xf32>
    %121 = vector.broadcast %5 : vector<1x512xf32> to vector<4x512xf32>
    %122 = arith.mulf %120, %121 : vector<4x512xf32>
    %123 = arith.addf %116, %122 : vector<4x512xf32>
    %c496_i32_85 = arith.constant 496 : i32
    %124 = tpu.dynamic_rotate %75 by %c496_i32_85 dim 1 : vector<4x512xf32>, i32 -> vector<4x512xf32>
    %c7_86 = arith.constant 7 : index
    %c0_87 = arith.constant 0 : index
    %c0_88 = arith.constant 0 : index
    %125 = vector.load %arg5[%c7_86, %c0_87, %c0_88] : memref<9x4x4xf32, #tpu.memory_space<vmem>>, vector<1x4x4xf32>
    %126 = vector.shape_cast %125 : vector<1x4x4xf32> to vector<4x4xf32>
    %cst_89 = arith.constant dense<0.000000e+00> : vector<4x512xf32>
    %127 = tpu.matmul %126, %124, %cst_89 {dimension_numbers = #tpu.dot_dimension_numbers<[1], [0], [0], [1], [0, 0, 1, 1], [], []>} : vector<4x4xf32>, vector<4x512xf32>, vector<4x512xf32> -> vector<4x512xf32>
    %128 = vector.broadcast %6 : vector<1x512xf32> to vector<4x512xf32>
    %129 = arith.mulf %127, %128 : vector<4x512xf32>
    %130 = arith.addf %123, %129 : vector<4x512xf32>
    %c495_i32_90 = arith.constant 495 : i32
    %131 = tpu.dynamic_rotate %75 by %c495_i32_90 dim 1 : vector<4x512xf32>, i32 -> vector<4x512xf32>
    %c8_91 = arith.constant 8 : index
    %c0_92 = arith.constant 0 : index
    %c0_93 = arith.constant 0 : index
    %132 = vector.load %arg5[%c8_91, %c0_92, %c0_93] : memref<9x4x4xf32, #tpu.memory_space<vmem>>, vector<1x4x4xf32>
    %133 = vector.shape_cast %132 : vector<1x4x4xf32> to vector<4x4xf32>
    %cst_94 = arith.constant dense<0.000000e+00> : vector<4x512xf32>
    %134 = tpu.matmul %133, %131, %cst_94 {dimension_numbers = #tpu.dot_dimension_numbers<[1], [0], [0], [1], [0, 0, 1, 1], [], []>} : vector<4x4xf32>, vector<4x512xf32>, vector<4x512xf32> -> vector<4x512xf32>
    %135 = vector.broadcast %7 : vector<1x512xf32> to vector<4x512xf32>
    %136 = arith.mulf %134, %135 : vector<4x512xf32>
    %137 = arith.addf %130, %136 : vector<4x512xf32>
    %cst_95 = arith.constant 0.000000e+00 : f32
    %138 = vector.broadcast %cst_95 : f32 to vector<4x512xf32>
    %139 = arith.maximumf %137, %138 : vector<4x512xf32>
    %c0_96 = arith.constant 0 : index
    %c2_97 = arith.constant 2 : index
    %140 = vector.load %arg6[%c0_96, %c2_97] : memref<4x3xf32, #tpu.memory_space<vmem>>, vector<4x1xf32>
    %141 = vector.broadcast %140 : vector<4x1xf32> to vector<4x512xf32>
    %142 = arith.addf %139, %141 : vector<4x512xf32>
    %c4_98 = arith.constant 4 : index
    %c0_99 = arith.constant 0 : index
    %c0_100 = arith.constant 0 : index
    %143 = vector.load %arg7[%c4_98, %c0_99, %c0_100] : memref<9x4x4xf32, #tpu.memory_space<vmem>>, vector<1x4x4xf32>
    %144 = vector.shape_cast %143 : vector<1x4x4xf32> to vector<4x4xf32>
    %cst_101 = arith.constant dense<0.000000e+00> : vector<4x512xf32>
    %145 = tpu.matmul %144, %142, %cst_101 {dimension_numbers = #tpu.dot_dimension_numbers<[1], [0], [0], [1], [0, 0, 1, 1], [], []>} : vector<4x4xf32>, vector<4x512xf32>, vector<4x512xf32> -> vector<4x512xf32>
    %c0_102 = arith.constant 0 : index
    %c0_103 = arith.constant 0 : index
    %146 = vector.load %arg8[%c0_102, %c0_103] : memref<4x3xf32, #tpu.memory_space<vmem>>, vector<4x1xf32>
    %147 = vector.broadcast %146 : vector<4x1xf32> to vector<4x512xf32>
    %148 = arith.addf %145, %147 : vector<4x512xf32>
    %c17_i32_104 = arith.constant 17 : i32
    %149 = tpu.dynamic_rotate %142 by %c17_i32_104 dim 1 : vector<4x512xf32>, i32 -> vector<4x512xf32>
    %c0_105 = arith.constant 0 : index
    %c0_106 = arith.constant 0 : index
    %c0_107 = arith.constant 0 : index
    %150 = vector.load %arg7[%c0_105, %c0_106, %c0_107] : memref<9x4x4xf32, #tpu.memory_space<vmem>>, vector<1x4x4xf32>
    %151 = vector.shape_cast %150 : vector<1x4x4xf32> to vector<4x4xf32>
    %cst_108 = arith.constant dense<0.000000e+00> : vector<4x512xf32>
    %152 = tpu.matmul %151, %149, %cst_108 {dimension_numbers = #tpu.dot_dimension_numbers<[1], [0], [0], [1], [0, 0, 1, 1], [], []>} : vector<4x4xf32>, vector<4x512xf32>, vector<4x512xf32> -> vector<4x512xf32>
    %153 = vector.broadcast %0 : vector<1x512xf32> to vector<4x512xf32>
    %154 = arith.mulf %152, %153 : vector<4x512xf32>
    %155 = arith.addf %148, %154 : vector<4x512xf32>
    %c16_i32_109 = arith.constant 16 : i32
    %156 = tpu.dynamic_rotate %142 by %c16_i32_109 dim 1 : vector<4x512xf32>, i32 -> vector<4x512xf32>
    %c1_110 = arith.constant 1 : index
    %c0_111 = arith.constant 0 : index
    %c0_112 = arith.constant 0 : index
    %157 = vector.load %arg7[%c1_110, %c0_111, %c0_112] : memref<9x4x4xf32, #tpu.memory_space<vmem>>, vector<1x4x4xf32>
    %158 = vector.shape_cast %157 : vector<1x4x4xf32> to vector<4x4xf32>
    %cst_113 = arith.constant dense<0.000000e+00> : vector<4x512xf32>
    %159 = tpu.matmul %158, %156, %cst_113 {dimension_numbers = #tpu.dot_dimension_numbers<[1], [0], [0], [1], [0, 0, 1, 1], [], []>} : vector<4x4xf32>, vector<4x512xf32>, vector<4x512xf32> -> vector<4x512xf32>
    %160 = vector.broadcast %1 : vector<1x512xf32> to vector<4x512xf32>
    %161 = arith.mulf %159, %160 : vector<4x512xf32>
    %162 = arith.addf %155, %161 : vector<4x512xf32>
    %c15_i32_114 = arith.constant 15 : i32
    %163 = tpu.dynamic_rotate %142 by %c15_i32_114 dim 1 : vector<4x512xf32>, i32 -> vector<4x512xf32>
    %c2_115 = arith.constant 2 : index
    %c0_116 = arith.constant 0 : index
    %c0_117 = arith.constant 0 : index
    %164 = vector.load %arg7[%c2_115, %c0_116, %c0_117] : memref<9x4x4xf32, #tpu.memory_space<vmem>>, vector<1x4x4xf32>
    %165 = vector.shape_cast %164 : vector<1x4x4xf32> to vector<4x4xf32>
    %cst_118 = arith.constant dense<0.000000e+00> : vector<4x512xf32>
    %166 = tpu.matmul %165, %163, %cst_118 {dimension_numbers = #tpu.dot_dimension_numbers<[1], [0], [0], [1], [0, 0, 1, 1], [], []>} : vector<4x4xf32>, vector<4x512xf32>, vector<4x512xf32> -> vector<4x512xf32>
    %167 = vector.broadcast %2 : vector<1x512xf32> to vector<4x512xf32>
    %168 = arith.mulf %166, %167 : vector<4x512xf32>
    %169 = arith.addf %162, %168 : vector<4x512xf32>
    %c1_i32_119 = arith.constant 1 : i32
    %170 = tpu.dynamic_rotate %142 by %c1_i32_119 dim 1 : vector<4x512xf32>, i32 -> vector<4x512xf32>
    %c3_120 = arith.constant 3 : index
    %c0_121 = arith.constant 0 : index
    %c0_122 = arith.constant 0 : index
    %171 = vector.load %arg7[%c3_120, %c0_121, %c0_122] : memref<9x4x4xf32, #tpu.memory_space<vmem>>, vector<1x4x4xf32>
    %172 = vector.shape_cast %171 : vector<1x4x4xf32> to vector<4x4xf32>
    %cst_123 = arith.constant dense<0.000000e+00> : vector<4x512xf32>
    %173 = tpu.matmul %172, %170, %cst_123 {dimension_numbers = #tpu.dot_dimension_numbers<[1], [0], [0], [1], [0, 0, 1, 1], [], []>} : vector<4x4xf32>, vector<4x512xf32>, vector<4x512xf32> -> vector<4x512xf32>
    %174 = vector.broadcast %3 : vector<1x512xf32> to vector<4x512xf32>
    %175 = arith.mulf %173, %174 : vector<4x512xf32>
    %176 = arith.addf %169, %175 : vector<4x512xf32>
    %c511_i32_124 = arith.constant 511 : i32
    %177 = tpu.dynamic_rotate %142 by %c511_i32_124 dim 1 : vector<4x512xf32>, i32 -> vector<4x512xf32>
    %c5_125 = arith.constant 5 : index
    %c0_126 = arith.constant 0 : index
    %c0_127 = arith.constant 0 : index
    %178 = vector.load %arg7[%c5_125, %c0_126, %c0_127] : memref<9x4x4xf32, #tpu.memory_space<vmem>>, vector<1x4x4xf32>
    %179 = vector.shape_cast %178 : vector<1x4x4xf32> to vector<4x4xf32>
    %cst_128 = arith.constant dense<0.000000e+00> : vector<4x512xf32>
    %180 = tpu.matmul %179, %177, %cst_128 {dimension_numbers = #tpu.dot_dimension_numbers<[1], [0], [0], [1], [0, 0, 1, 1], [], []>} : vector<4x4xf32>, vector<4x512xf32>, vector<4x512xf32> -> vector<4x512xf32>
    %181 = vector.broadcast %4 : vector<1x512xf32> to vector<4x512xf32>
    %182 = arith.mulf %180, %181 : vector<4x512xf32>
    %183 = arith.addf %176, %182 : vector<4x512xf32>
    %c497_i32_129 = arith.constant 497 : i32
    %184 = tpu.dynamic_rotate %142 by %c497_i32_129 dim 1 : vector<4x512xf32>, i32 -> vector<4x512xf32>
    %c6_130 = arith.constant 6 : index
    %c0_131 = arith.constant 0 : index
    %c0_132 = arith.constant 0 : index
    %185 = vector.load %arg7[%c6_130, %c0_131, %c0_132] : memref<9x4x4xf32, #tpu.memory_space<vmem>>, vector<1x4x4xf32>
    %186 = vector.shape_cast %185 : vector<1x4x4xf32> to vector<4x4xf32>
    %cst_133 = arith.constant dense<0.000000e+00> : vector<4x512xf32>
    %187 = tpu.matmul %186, %184, %cst_133 {dimension_numbers = #tpu.dot_dimension_numbers<[1], [0], [0], [1], [0, 0, 1, 1], [], []>} : vector<4x4xf32>, vector<4x512xf32>, vector<4x512xf32> -> vector<4x512xf32>
    %188 = vector.broadcast %5 : vector<1x512xf32> to vector<4x512xf32>
    %189 = arith.mulf %187, %188 : vector<4x512xf32>
    %190 = arith.addf %183, %189 : vector<4x512xf32>
    %c496_i32_134 = arith.constant 496 : i32
    %191 = tpu.dynamic_rotate %142 by %c496_i32_134 dim 1 : vector<4x512xf32>, i32 -> vector<4x512xf32>
    %c7_135 = arith.constant 7 : index
    %c0_136 = arith.constant 0 : index
    %c0_137 = arith.constant 0 : index
    %192 = vector.load %arg7[%c7_135, %c0_136, %c0_137] : memref<9x4x4xf32, #tpu.memory_space<vmem>>, vector<1x4x4xf32>
    %193 = vector.shape_cast %192 : vector<1x4x4xf32> to vector<4x4xf32>
    %cst_138 = arith.constant dense<0.000000e+00> : vector<4x512xf32>
    %194 = tpu.matmul %193, %191, %cst_138 {dimension_numbers = #tpu.dot_dimension_numbers<[1], [0], [0], [1], [0, 0, 1, 1], [], []>} : vector<4x4xf32>, vector<4x512xf32>, vector<4x512xf32> -> vector<4x512xf32>
    %195 = vector.broadcast %6 : vector<1x512xf32> to vector<4x512xf32>
    %196 = arith.mulf %194, %195 : vector<4x512xf32>
    %197 = arith.addf %190, %196 : vector<4x512xf32>
    %c495_i32_139 = arith.constant 495 : i32
    %198 = tpu.dynamic_rotate %142 by %c495_i32_139 dim 1 : vector<4x512xf32>, i32 -> vector<4x512xf32>
    %c8_140 = arith.constant 8 : index
    %c0_141 = arith.constant 0 : index
    %c0_142 = arith.constant 0 : index
    %199 = vector.load %arg7[%c8_140, %c0_141, %c0_142] : memref<9x4x4xf32, #tpu.memory_space<vmem>>, vector<1x4x4xf32>
    %200 = vector.shape_cast %199 : vector<1x4x4xf32> to vector<4x4xf32>
    %cst_143 = arith.constant dense<0.000000e+00> : vector<4x512xf32>
    %201 = tpu.matmul %200, %198, %cst_143 {dimension_numbers = #tpu.dot_dimension_numbers<[1], [0], [0], [1], [0, 0, 1, 1], [], []>} : vector<4x4xf32>, vector<4x512xf32>, vector<4x512xf32> -> vector<4x512xf32>
    %202 = vector.broadcast %7 : vector<1x512xf32> to vector<4x512xf32>
    %203 = arith.mulf %201, %202 : vector<4x512xf32>
    %204 = arith.addf %197, %203 : vector<4x512xf32>
    %cst_144 = arith.constant 0.000000e+00 : f32
    %205 = vector.broadcast %cst_144 : f32 to vector<4x512xf32>
    %206 = arith.maximumf %204, %205 : vector<4x512xf32>
    %c0_145 = arith.constant 0 : index
    %c1_146 = arith.constant 1 : index
    %207 = vector.load %arg8[%c0_145, %c1_146] : memref<4x3xf32, #tpu.memory_space<vmem>>, vector<4x1xf32>
    %208 = vector.broadcast %207 : vector<4x1xf32> to vector<4x512xf32>
    %209 = arith.mulf %206, %208 : vector<4x512xf32>
    %c0_147 = arith.constant 0 : index
    %c2_148 = arith.constant 2 : index
    %210 = vector.load %arg8[%c0_147, %c2_148] : memref<4x3xf32, #tpu.memory_space<vmem>>, vector<4x1xf32>
    %211 = vector.broadcast %210 : vector<4x1xf32> to vector<4x512xf32>
    %212 = arith.addf %209, %211 : vector<4x512xf32>
    %c0_149 = arith.constant 0 : index
    %c0_150 = arith.constant 0 : index
    %213 = vector.load %arg9[%c0_149, %c0_150] : memref<4x512xf32, #tpu.memory_space<vmem>>, vector<4x512xf32>
    tpu.vector_store %arg9[%c0_149, %c0_150], %212 {strides = array<i32>} : memref<4x512xf32, #tpu.memory_space<vmem>>, vector<4x512xf32>,
    return
  }
  func.func @transform_0(%arg0: i32) -> (i32, i32) {
    %c0_i32 = arith.constant 0 : i32
    %c0_i32_0 = arith.constant 0 : i32
    return %c0_i32, %arg0 : i32, i32
  }
  func.func @transform_1(%arg0: i32) -> (i32, i32) {
    %c0_i32 = arith.constant 0 : i32
    %c0_i32_0 = arith.constant 0 : i32
    %c0_i32_1 = arith.constant 0 : i32
    return %c0_i32, %c0_i32_0 : i32, i32
  }
  func.func @transform_2(%arg0: i32) -> (i32, i32, i32) {
    %c0_i32 = arith.constant 0 : i32
    %c0_i32_0 = arith.constant 0 : i32
    %c0_i32_1 = arith.constant 0 : i32
    %c0_i32_2 = arith.constant 0 : i32
    return %c0_i32, %c0_i32_0, %c0_i32_1 : i32, i32, i32
  }
  func.func @transform_3(%arg0: i32) -> (i32, i32) {
    %c0_i32 = arith.constant 0 : i32
    %c0_i32_0 = arith.constant 0 : i32
    %c0_i32_1 = arith.constant 0 : i32
    return %c0_i32, %c0_i32_0 : i32, i32
  }
  func.func @transform_4(%arg0: i32) -> (i32, i32, i32) {
    %c0_i32 = arith.constant 0 : i32
    %c0_i32_0 = arith.constant 0 : i32
    %c0_i32_1 = arith.constant 0 : i32
    %c0_i32_2 = arith.constant 0 : i32
    return %c0_i32, %c0_i32_0, %c0_i32_1 : i32, i32, i32
  }
  func.func @transform_5(%arg0: i32) -> (i32, i32) {
    %c0_i32 = arith.constant 0 : i32
    %c0_i32_0 = arith.constant 0 : i32
    %c0_i32_1 = arith.constant 0 : i32
    return %c0_i32, %c0_i32_0 : i32, i32
  }
  func.func @transform_6(%arg0: i32) -> (i32, i32, i32) {
    %c0_i32 = arith.constant 0 : i32
    %c0_i32_0 = arith.constant 0 : i32
    %c0_i32_1 = arith.constant 0 : i32
    %c0_i32_2 = arith.constant 0 : i32
    return %c0_i32, %c0_i32_0, %c0_i32_1 : i32, i32, i32
  }
  func.func @transform_7(%arg0: i32) -> (i32, i32) {
    %c0_i32 = arith.constant 0 : i32
    %c0_i32_0 = arith.constant 0 : i32
    %c0_i32_1 = arith.constant 0 : i32
    return %c0_i32, %c0_i32_0 : i32, i32
  }
  func.func @transform_8(%arg0: i32) -> (i32, i32) {
    %c0_i32 = arith.constant 0 : i32
    %c0_i32_0 = arith.constant 0 : i32
    return %c0_i32, %arg0 : i32, i32
  }
}

</mosaic_0001>

<bundles_post_ra>
// kernel: decoder_layer3_forward.1
= control target key start
LH: loop header
LB: loop body
LE: loop exit
PB: predicated region body
PF: predicated region fallthrough
CT: control target
= control target key end

     0   :  { %v6038_v3 = vmov 0.0   ;;  %s5145_s11 = smov 17   ;;  %vm56_vm0 = vcmask 64512   ;;  %s5147_s16 = smov 15   ;;  %v6037_v6 = vmov 0   ;;  %v6035_v7 = vmov 2   ;;  %s6026_s0 = inlined_call_operand.vmem [shape: f32[8,512], index: 0, kind: input, shape index: {}]   ;;  %s6027_s2 = inlined_call_operand.vmem [shape: f32[9,4,8], index: 2, kind: input, shape index: {}]   ;;  %s6028_s3 = inlined_call_operand.vmem [shape: f32[4,3], index: 3, kind: input, shape index: {}]   ;;  %s6029_s1 = inlined_call_operand.vmem [shape: f32[9,512], index: 1, kind: input, shape index: {}]   ;;  %s6030_s4 = inlined_call_operand.vmem [shape: f32[9,4,4], index: 4, kind: input, shape index: {}]   ;;  %s6031_s5 = inlined_call_operand.vmem [shape: f32[4,3], index: 5, kind: input, shape index: {}]   ;;  %s6032_s6 = inlined_call_operand.vmem [shape: f32[9,4,4], index: 6, kind: input, shape index: {}]   ;;  %s6033_s7 = inlined_call_operand.vmem [shape: f32[4,3], index: 7, kind: input, shape index: {}]   ;;  %s6034_s8 = inlined_call_operand.vmem [shape: f32[4,512], index: 8, kind: output, shape index: {}]  }
   0x1   :  { %v46_v0 = vld [vmem:[%s6026_s0 + $0x10] sm:$0xff]  ;;  %v44_v1 = vld [vmem:[%s6026_s0] sm:$0xff]  ;;  %v47_v2 = vld [vmem:[%s6026_s0 + $0x18] sm:$0xff]  ;;  %124 = vmatprep.mubr.f32.mxu0 %v6038_v3  ;;  %195 = vmatprep.mubr.f32.mxu1 %v6038_v3  ;;  %s5148_s17 = smov 1   ;;  %s5149_s18 = smov 127   ;;  %v210_v9 = vlaneseq  ;;  %vm1739_vm9 = vcmask 1043456  }
   0x2   :  { %206 = vrot.lane.b32.xlu1 %v46_v0, %s5145_s11  ;;  %202 = vrot.lane.b32.xlu0 %v44_v1, %s5145_s11  ;;  %v45_v4 = vld [vmem:[%s6026_s0 + $0x8] sm:$0xff]  ;;  %v4974_v5 = vld [vmem:[%s6027_s2 + $0x10] sm:$0xf]  ;;  %s5146_s0 = smov 16   ;;  %s5150_s19 = smov 113   ;;  %vm1735_vm10 = vcmask 31744  }
   0x3   :  { %161 = vmatprep.subr.mxu1 %v47_v2  ;;  %90 = vmatprep.subr.mxu0 %v45_v4  ;;  %s5151_s20 = smov 112   ;;  %s5154_s21 = smov 111   ;;  %v50_v8 = vld [vmem:[%s6028_s3] sm:$0xf]  ;;  %v5262_v10 = vand.u32 127, %v210_v9 }
   0x4   :  { %91 = vmatpush1.msra.mxu0 %v44_v1  ;;  %162 = vmatpush1.msra.mxu1 %v46_v0  ;;  %v217_v19 = vld [vmem:[%s6027_s2] sm:$0xf]  ;;  %v4979_v25 = vld [vmem:[%s6027_s2 + $0x4] sm:$0xf]  ;;  %v4982_v34 = vld [vmem:[%s6027_s2 + $0x8] sm:$0xf] }
   0x5   :  { %4975 = vmatmul.mubr.msk.f32.vlgmr.msra.gmra.mxu0 %vm56_vm0, %v4974_v5  ;;  %4976 = vmatmul.mubr.msk.f32.vlgmr.msra.gmra.mxu1 %vm56_vm0, %v4974_v5  ;;  %6050 = vst [vmem:[#allocation2_spill] sm:$0xff] %v5262_v10  ;;  %vm212_vm1 = vcmp.lt.s32.totalorder %v5262_v10, 17  ;;  %vm400_vm2 = vcmp.lt.s32.totalorder %v5262_v10, 16  ;;  %vm589_vm3 = vcmp.lt.s32.totalorder %v5262_v10, 15  ;;  %vm778_vm4 = vcmp.lt.s32.totalorder %v5262_v10, 1 }
   0x6   :  { %208 = vrot.lane.b32.xlu1 %v47_v2, %s5145_s11  ;;  %204 = vrot.lane.b32.xlu0 %v45_v4, %s5145_s11  ;;  %v4985_v43 = vld [vmem:[%s6027_s2 + $0xc] sm:$0xf]  ;;  %vm967_vm5 = vcmp.lt.s32.totalorder %v5262_v10, 127  ;;  %v4988_v54 = vld [vmem:[%s6027_s2 + $0x14] sm:$0xf]  ;;  %vm1156_vm6 = vcmp.lt.s32.totalorder %v5262_v10, 113 }
   0x7   :  { %285 = vmatprep.mubr.f32.mxu0 %v6038_v3  ;;  %356 = vmatprep.mubr.f32.mxu1 %v6038_v3  ;;  %v4991_v63 = vld [vmem:[%s6027_s2 + $0x18] sm:$0xf]  ;;  %vm1345_vm7 = vcmp.lt.s32.totalorder %v5262_v10, 112  ;;  %vm1534_vm8 = vcmp.lt.s32.totalorder %v5262_v10, 111 }
   0x8   :  { %5136 = vset.pattern.permute.xlu0 %v6037_v6  ;;  %5137 = vset.pattern.permute.xlu1 %v6035_v7 }
   0xa   :  { %394 = vrot.lane.b32.xlu1 %v45_v4, %s5146_s0  ;;  %392 = vrot.lane.b32.xlu0 %v44_v1, %s5146_s0 }
   0xe   :  { %398 = vrot.lane.b32.xlu1 %v47_v2, %s5146_s0  ;;  %396 = vrot.lane.b32.xlu0 %v46_v0, %s5146_s0 }
  0x12   :  { %583 = vrot.lane.b32.xlu1 %v45_v4, %s5147_s16  ;;  %581 = vrot.lane.b32.xlu0 %v44_v1, %s5147_s16 }
  0x16   :  { %587 = vrot.lane.b32.xlu1 %v47_v2, %s5147_s16  ;;  %585 = vrot.lane.b32.xlu0 %v46_v0, %s5147_s16 }
  0x1a   :  { %772 = vrot.lane.b32.xlu1 %v45_v4, %s5148_s17  ;;  %770 = vrot.lane.b32.xlu0 %v44_v1, %s5148_s17 }
  0x1e   :  { %776 = vrot.lane.b32.xlu1 %v47_v2, %s5148_s17  ;;  %774 = vrot.lane.b32.xlu0 %v46_v0, %s5148_s17 }
  0x22   :  { %961 = vrot.lane.b32.xlu1 %v45_v4, %s5149_s18  ;;  %959 = vrot.lane.b32.xlu0 %v44_v1, %s5149_s18 }
  0x26   :  { %965 = vrot.lane.b32.xlu1 %v47_v2, %s5149_s18  ;;  %963 = vrot.lane.b32.xlu0 %v46_v0, %s5149_s18 }
  0x2a   :  { %1150 = vrot.lane.b32.xlu1 %v45_v4, %s5150_s19  ;;  %1148 = vrot.lane.b32.xlu0 %v44_v1, %s5150_s19 }
  0x2e   :  { %1154 = vrot.lane.b32.xlu1 %v47_v2, %s5150_s19  ;;  %1152 = vrot.lane.b32.xlu0 %v46_v0, %s5150_s19 }
  0x32   :  { %1339 = vrot.lane.b32.xlu1 %v45_v4, %s5151_s20  ;;  %1337 = vrot.lane.b32.xlu0 %v44_v1, %s5151_s20 }
  0x36   :  { %1343 = vrot.lane.b32.xlu1 %v47_v2, %s5151_s20  ;;  %1341 = vrot.lane.b32.xlu0 %v46_v0, %s5151_s20 }
  0x3a   :  { %1528 = vrot.lane.b32.xlu1 %v45_v4, %s5154_s21  ;;  %1526 = vrot.lane.b32.xlu0 %v44_v1, %s5154_s21 }
  0x3e   :  { %1532 = vrot.lane.b32.xlu1 %v47_v2, %s5154_s21  ;;  %1530 = vrot.lane.b32.xlu0 %v46_v0, %s5154_s21 }
  0x42   :  { %53 = vperm.xlu0 %5136, %v50_v8   ;;  %1720 = vperm.xlu1 %5137, %v50_v8  }
  0x46   :  { %5138 = vset.pattern.permute.xlu1 %v6037_v6  ;;  %5139 = vset.pattern.permute.xlu0 %v6035_v7 }
  0x74   :  { %v207_v11 = vpop.permute.xlu1 %206  ;;  %v203_v12 = vpop.permute.xlu0 %202 }
  0x78   :  { %v209_v13 = vpop.permute.xlu1 %208  ;;  %v205_v14 = vpop.permute.xlu0 %204 }
  0x79   :  { %v214_v15 = vsel %vm212_vm1, %v205_v14, %v207_v11  ;;  %v215_v16 = vsel %vm212_vm1, %v203_v12, %v205_v14  ;;  %v213_v17 = vsel %vm212_vm1, %v207_v11, %v209_v13  ;;  %v216_v18 = vsel %vm212_vm1, %v209_v13, %v203_v12  ;;  %v4994_v13 = vld [vmem:[%s6027_s2 + $0x1c] sm:$0xf] }
  0x7a   :  { %251 = vmatprep.subr.mxu0 %v215_v16  ;;  %322 = vmatprep.subr.mxu1 %v213_v17 }
  0x7b   :  { %252 = vmatpush1.msra.mxu0 %v216_v18  ;;  %323 = vmatpush1.msra.mxu1 %v214_v15 }
  0x7c   :  { %v395_v20 = vpop.permute.xlu1 %394  ;;  %v393_v21 = vpop.permute.xlu0 %392  ;;  %4977 = vmatmul.mubr.msk.f32.vlgmr.msra.gmra.mxu0 %vm56_vm0, %v217_v19  ;;  %4978 = vmatmul.mubr.msk.f32.vlgmr.msra.gmra.mxu1 %vm56_vm0, %v217_v19 }
  0x7d   :  { %v403_v22 = vsel %vm400_vm2, %v393_v21, %v395_v20  ;;  %474 = vmatprep.mubr.f32.mxu0 %v6038_v3  ;;  %545 = vmatprep.mubr.f32.mxu1 %v6038_v3 }
  0x7e   :  { %440 = vmatprep.subr.mxu0 %v403_v22  ;;  %v4997_v22 = vld [vmem:[%s6027_s2 + $0x20] sm:$0xf] }
  0x80   :  { %v399_v23 = vpop.permute.xlu1 %398  ;;  %v397_v24 = vpop.permute.xlu0 %396 }
  0x81   :  { %v402_v26 = vsel %vm400_vm2, %v395_v20, %v397_v24  ;;  %v404_v27 = vsel %vm400_vm2, %v399_v23, %v393_v21  ;;  %v401_v28 = vsel %vm400_vm2, %v397_v24, %v399_v23 }
  0x82   :  { %441 = vmatpush1.msra.mxu0 %v404_v27  ;;  %511 = vmatprep.subr.mxu1 %v401_v28 }
  0x83   :  { %512 = vmatpush1.msra.mxu1 %v402_v26  ;;  %4980 = vmatmul.mubr.msk.f32.vlgmr.msra.gmra.mxu0 %vm56_vm0, %v4979_v25 }
  0x84   :  { %v584_v29 = vpop.permute.xlu1 %583  ;;  %v582_v30 = vpop.permute.xlu0 %581  ;;  %4981 = vmatmul.mubr.msk.f32.vlgmr.msra.gmra.mxu1 %vm56_vm0, %v4979_v25  ;;  %663 = vmatprep.mubr.f32.mxu0 %v6038_v3 }
  0x85   :  { %v592_v31 = vsel %vm589_vm3, %v582_v30, %v584_v29  ;;  %734 = vmatprep.mubr.f32.mxu1 %v6038_v3 }
  0x86   :  { %629 = vmatprep.subr.mxu0 %v592_v31 }
  0x88   :  { %v588_v32 = vpop.permute.xlu1 %587  ;;  %v586_v33 = vpop.permute.xlu0 %585 }
  0x89   :  { %v593_v35 = vsel %vm589_vm3, %v588_v32, %v582_v30  ;;  %v591_v36 = vsel %vm589_vm3, %v584_v29, %v586_v33  ;;  %v590_v37 = vsel %vm589_vm3, %v586_v33, %v588_v32 }
  0x8a   :  { %630 = vmatpush1.msra.mxu0 %v593_v35  ;;  %700 = vmatprep.subr.mxu1 %v590_v37 }
  0x8b   :  { %701 = vmatpush1.msra.mxu1 %v591_v36  ;;  %4983 = vmatmul.mubr.msk.f32.vlgmr.msra.gmra.mxu0 %vm56_vm0, %v4982_v34 }
  0x8c   :  { %v773_v38 = vpop.permute.xlu1 %772  ;;  %v771_v39 = vpop.permute.xlu0 %770  ;;  %4984 = vmatmul.mubr.msk.f32.vlgmr.msra.gmra.mxu1 %vm56_vm0, %v4982_v34  ;;  %852 = vmatprep.mubr.f32.mxu0 %v6038_v3 }
  0x8d   :  { %v781_v40 = vsel %vm778_vm4, %v771_v39, %v773_v38  ;;  %923 = vmatprep.mubr.f32.mxu1 %v6038_v3 }
  0x8e   :  { %818 = vmatprep.subr.mxu0 %v781_v40 }
  0x90   :  { %v777_v41 = vpop.permute.xlu1 %776  ;;  %v775_v42 = vpop.permute.xlu0 %774 }
  0x91   :  { %v782_v44 = vsel %vm778_vm4, %v777_v41, %v771_v39  ;;  %v780_v45 = vsel %vm778_vm4, %v773_v38, %v775_v42  ;;  %v779_v46 = vsel %vm778_vm4, %v775_v42, %v777_v41  ;;  %v365_v38 = vshrl.u32 %v210_v9, 7 }
  0x92   :  { %819 = vmatpush1.msra.mxu0 %v782_v44  ;;  %889 = vmatprep.subr.mxu1 %v779_v46 }
  0x93   :  { %890 = vmatpush1.msra.mxu1 %v780_v45  ;;  %4986 = vmatmul.mubr.msk.f32.vlgmr.msra.gmra.mxu0 %vm56_vm0, %v4985_v43  ;;  %v5395_v41 = vsub.s32 0, %v365_v38  ;;  %v5397_v42 = vsub.s32 2, %v365_v38  ;;  %v5402_v44 = vsub.s32 3, %v365_v38  ;;  %v5404_v45 = vsub.s32 1, %v365_v38 }
  0x94   :  { %v962_v47 = vpop.permute.xlu1 %961  ;;  %v960_v48 = vpop.permute.xlu0 %959  ;;  %4987 = vmatmul.mubr.msk.f32.vlgmr.msra.gmra.mxu1 %vm56_vm0, %v4985_v43  ;;  %1041 = vmatprep.mubr.f32.mxu0 %v6038_v3  ;;  %v29_v43 = vld [vmem:[%s6029_s1] ss:$8 sm:$0xf] }
  0x95   :  { %1112 = vmatprep.mubr.f32.mxu1 %v6038_v3  ;;  %v970_v55 = vsel %vm967_vm5, %v960_v48, %v962_v47  ;;  %v5410_v9 = vrot.slane %v29_v43, %v5397_v42 }
  0x97   :  { %6051 = vst [vmem:[#allocation3_spill] sm:$0xff] %v5410_v9 }
  0x98   :  { %v966_v49 = vpop.permute.xlu1 %965  ;;  %v964_v50 = vpop.permute.xlu0 %963 }
  0x99   :  { %v968_v51 = vsel %vm967_vm5, %v964_v50, %v966_v49  ;;  %v969_v52 = vsel %vm967_vm5, %v962_v47, %v964_v50  ;;  %v971_v53 = vsel %vm967_vm5, %v966_v49, %v960_v48  ;;  %v5407_v48 = vrot.slane %v29_v43, %v5395_v41  ;;  %v4967_v49 = vld [vmem:[%s6029_s1 + $0x1] ss:$8 sm:$0xf] }
  0x9a   :  { %1007 = vmatprep.subr.mxu0 %v969_v52  ;;  %1078 = vmatprep.subr.mxu1 %v971_v53  ;;  %v5416_v50 = vrot.slane %v29_v43, %v5402_v44  ;;  %v5419_v52 = vrot.slane %v29_v43, %v5404_v45  ;;  %v5422_v53 = vrot.slane %v4967_v49, %v5395_v41 }
  0x9b   :  { %1008 = vmatpush1.msra.mxu0 %v970_v55  ;;  %1079 = vmatpush1.msra.mxu1 %v968_v51 }
  0x9c   :  { %v1151_v56 = vpop.permute.xlu1 %1150  ;;  %v1149_v57 = vpop.permute.xlu0 %1148  ;;  %4989 = vmatmul.mubr.msk.f32.vlgmr.msra.gmra.mxu0 %vm56_vm0, %v4988_v54  ;;  %4990 = vmatmul.mubr.msk.f32.vlgmr.msra.gmra.mxu1 %vm56_vm0, %v4988_v54  ;;  %v5425_v54 = vrot.slane %v4967_v49, %v5397_v42 }
  0x9d   :  { %1230 = vmatprep.mubr.f32.mxu0 %v6038_v3  ;;  %1301 = vmatprep.mubr.f32.mxu1 %v6038_v3  ;;  %v1159_v0 = vsel %vm1156_vm6, %v1149_v57, %v1151_v56 }
  0xa0   :  { %v1155_v58 = vpop.permute.xlu1 %1154  ;;  %v1153_v59 = vpop.permute.xlu0 %1152 }
  0xa1   :  { %v1157_v60 = vsel %vm1156_vm6, %v1153_v59, %v1155_v58  ;;  %v1158_v61 = vsel %vm1156_vm6, %v1151_v56, %v1153_v59  ;;  %v1160_v62 = vsel %vm1156_vm6, %v1155_v58, %v1149_v57 }
  0xa2   :  { %1196 = vmatprep.subr.mxu0 %v1158_v61  ;;  %1267 = vmatprep.subr.mxu1 %v1160_v62  ;;  %v4968_v61 = vld [vmem:[%s6029_s1 + $0x2] ss:$8 sm:$0xf] }
  0xa3   :  { %1197 = vmatpush1.msra.mxu0 %v1159_v0  ;;  %1268 = vmatpush1.msra.mxu1 %v1157_v60 }
  0xa4   :  { %v1340_v1 = vpop.permute.xlu1 %1339  ;;  %4993 = vmatmul.mubr.msk.f32.vlgmr.msra.gmra.mxu1 %vm56_vm0, %v4991_v63  ;;  %v1338_v2 = vpop.permute.xlu0 %1337  ;;  %4992 = vmatmul.mubr.msk.f32.vlgmr.msra.gmra.mxu0 %vm56_vm0, %v4991_v63  ;;  %v5436_v63 = vrot.slane %v4967_v49, %v5402_v44 }
  0xa5   :  { %1419 = vmatprep.mubr.f32.mxu0 %v6038_v3  ;;  %1490 = vmatprep.mubr.f32.mxu1 %v6038_v3  ;;  %v1348_v14 = vsel %vm1345_vm7, %v1338_v2, %v1340_v1 }
  0xa8   :  { %v1344_v4 = vpop.permute.xlu1 %1343  ;;  %v1342_v5 = vpop.permute.xlu0 %1341 }
  0xa9   :  { %v1346_v8 = vsel %vm1345_vm7, %v1342_v5, %v1344_v4  ;;  %v1347_v11 = vsel %vm1345_vm7, %v1340_v1, %v1342_v5  ;;  %v1349_v12 = vsel %vm1345_vm7, %v1344_v4, %v1338_v2  ;;  %v5439_v1 = vrot.slane %v4967_v49, %v5404_v45 }
  0xaa   :  { %1385 = vmatprep.subr.mxu0 %v1347_v11  ;;  %1456 = vmatprep.subr.mxu1 %v1349_v12  ;;  %v5443_v5 = vrot.slane %v4968_v61, %v5395_v41 }
  0xab   :  { %1386 = vmatpush1.msra.mxu0 %v1348_v14  ;;  %1457 = vmatpush1.msra.mxu1 %v1346_v8  ;;  %v5446_v8 = vrot.slane %v4968_v61, %v5397_v42 }
  0xac   :  { %v1529_v15 = vpop.permute.xlu1 %1528  ;;  %4996 = vmatmul.mubr.msk.f32.vlgmr.msra.gmra.mxu1 %vm56_vm0, %v4994_v13  ;;  %v1527_v16 = vpop.permute.xlu0 %1526  ;;  %4995 = vmatmul.mubr.msk.f32.vlgmr.msra.gmra.mxu0 %vm56_vm0, %v4994_v13 }
  0xad   :  { %1608 = vmatprep.mubr.f32.mxu0 %v6038_v3  ;;  %1679 = vmatprep.mubr.f32.mxu1 %v6038_v3  ;;  %v1537_v23 = vsel %vm1534_vm8, %v1527_v16, %v1529_v15 }
  0xb0   :  { %v1533_v17 = vpop.permute.xlu1 %1532  ;;  %v1531_v18 = vpop.permute.xlu0 %1530 }
  0xb1   :  { %v1535_v19 = vsel %vm1534_vm8, %v1531_v18, %v1533_v17  ;;  %v1536_v20 = vsel %vm1534_vm8, %v1529_v15, %v1531_v18  ;;  %v1538_v21 = vsel %vm1534_vm8, %v1533_v17, %v1527_v16  ;;  %v4969_v17 = vld [vmem:[%s6029_s1 + $0x3] ss:$8 sm:$0xf] }
  0xb2   :  { %1574 = vmatprep.subr.mxu0 %v1536_v20  ;;  %1645 = vmatprep.subr.mxu1 %v1538_v21  ;;  %v5455_v20 = vrot.slane %v4968_v61, %v5402_v44  ;;  %v5458_v21 = vrot.slane %v4968_v61, %v5404_v45  ;;  %v5477_v49 = vrot.slane %v4969_v17, %v5404_v45 }
  0xb3   :  { %1575 = vmatpush1.msra.mxu0 %v1537_v23  ;;  %1646 = vmatpush1.msra.mxu1 %v1535_v19 }
  0xb4   :  { %4998 = vmatmul.mubr.msk.f32.vlgmr.msra.gmra.mxu0 %vm56_vm0, %v4997_v22  ;;  %4999 = vmatmul.mubr.msk.f32.vlgmr.msra.gmra.mxu1 %vm56_vm0, %v4997_v22 }
  0xb5   :  { %1816 = vmatprep.mubr.f32.mxu0 %v6038_v3  ;;  %1887 = vmatprep.mubr.f32.mxu1 %v6038_v3 }
  0xbd   :  { %v54_v51 = vpop.permute.xlu0 %53 }
  0xc5   :  { %v126_v24 = vpop.f32.mrf.mxu0  ;;  %v197_v25 = vpop.f32.mrf.mxu1 }
  0xc6   :  { %v127_v59 = vadd.f32 %v126_v24, %v54_v51  ;;  %v198_v60 = vadd.f32 %v197_v25, %v54_v51  ;;  %v5462_v24 = vrot.slane %v4969_v17, %v5395_v41  ;;  %v5465_v25 = vrot.slane %v4969_v17, %v5397_v42 }
  0xc7   :  { %v128_v26 = vpop.f32.mrf.mxu0  ;;  %v199_v27 = vpop.f32.mrf.mxu1 }
  0xc8   :  { %v200_v0 = vadd.f32 %v199_v27, %v54_v51  ;;  %v129_v4 = vadd.f32 %v128_v26, %v54_v51  ;;  %v4970_v26 = vld [vmem:[%s6029_s1 + $0x5] ss:$8 sm:$0xf] }
  0xc9   :  { %v5480_v51 = vrot.slane %v4970_v26, %v5395_v41 }
 0x13c   :  { %v287_v28 = vpop.f32.mrf.mxu0  ;;  %v358_v29 = vpop.f32.mrf.mxu1 }
 0x13d   :  { %v384_v57 = vmul.f32 %v5407_v48, %v287_v28  ;;  %v386_v58 = vmul.f32 %v5410_v9, %v358_v29 }
 0x13e   :  { %v289_v30 = vpop.f32.mrf.mxu0  ;;  %v360_v31 = vpop.f32.mrf.mxu1 }
 0x13f   :  { %v387_v62 = vmul.f32 %v5416_v50, %v360_v31  ;;  %v385_v2 = vmul.f32 %v5419_v52, %v289_v30  ;;  %v388_v15 = vadd.f32 %v384_v57, %v127_v59  ;;  %v390_v16 = vadd.f32 %v386_v58, %v198_v60  ;;  %v4972_v59 = vld [vmem:[%s6029_s1 + $0x7] ss:$8 sm:$0xf] }
 0x140   :  { %v5491_v58 = vrot.slane %v4970_v26, %v5397_v42 }
 0x141   :  { %v391_v19 = vadd.f32 %v387_v62, %v200_v0  ;;  %v389_v23 = vadd.f32 %v385_v2, %v129_v4 }
 0x143   :  { %v476_v32 = vpop.f32.mrf.mxu0 }
 0x144   :  { %v547_v33 = vpop.f32.mrf.mxu1  ;;  %v573_v13 = vmul.f32 %v5422_v53, %v476_v32 }
 0x145   :  { %v478_v34 = vpop.f32.mrf.mxu0  ;;  %v575_v14 = vmul.f32 %v5425_v54, %v547_v33 }
 0x146   :  { %v549_v35 = vpop.f32.mrf.mxu1  ;;  %v574_v22 = vmul.f32 %v5439_v1, %v478_v34  ;;  %v577_v29 = vadd.f32 %v573_v13, %v388_v15 }
 0x147   :  { %v576_v18 = vmul.f32 %v5436_v63, %v549_v35  ;;  %v579_v31 = vadd.f32 %v575_v14, %v390_v16  ;;  %v5474_v35 = vrot.slane %v4969_v17, %v5402_v44 }
 0x148   :  { %v578_v57 = vadd.f32 %v574_v22, %v389_v23  ;;  %v5520_v23 = vrot.slane %v4972_v59, %v5397_v42 }
 0x149   :  { %v580_v33 = vadd.f32 %v576_v18, %v391_v19 }
 0x14b   :  { %v665_v36 = vpop.f32.mrf.mxu0 }
 0x14c   :  { %v736_v37 = vpop.f32.mrf.mxu1  ;;  %v762_v30 = vmul.f32 %v5443_v5, %v665_v36  ;;  %v4971_v36 = vld [vmem:[%s6029_s1 + $0x6] ss:$8 sm:$0xf] }
 0x14d   :  { %v5393_v39 = vpop.f32.mrf.mxu0  ;;  %v764_v32 = vmul.f32 %v5446_v8, %v736_v37  ;;  %v5503_v13 = vrot.slane %v4971_v36, %v5395_v41  ;;  %v5506_v16 = vrot.slane %v4971_v36, %v5397_v42  ;;  %v5509_v17 = vrot.slane %v4971_v36, %v5404_v45 }
 0x14e   :  { %v738_v40 = vpop.f32.mrf.mxu1  ;;  %v763_v37 = vmul.f32 %v5458_v21, %v5393_v39  ;;  %v766_v60 = vadd.f32 %v762_v30, %v577_v29  ;;  %v5500_v39 = vrot.slane %v4970_v26, %v5402_v44  ;;  %v4973_v29 = vld [vmem:[%s6029_s1 + $0x20] ss:$8 sm:$0xf] }
 0x14f   :  { %v765_v34 = vmul.f32 %v5455_v20, %v738_v40  ;;  %v5488_v40 = vrot.slane %v4970_v26, %v5404_v45  ;;  %v768_v61 = vadd.f32 %v764_v32, %v579_v31  ;;  %v5523_v26 = vrot.slane %v4972_v59, %v5404_v45 }
 0x151   :  { %v769_v2 = vadd.f32 %v765_v34, %v580_v33 }
 0x153   :  { %v854_v46 = vpop.f32.mrf.mxu0 }
 0x154   :  { %v925_v47 = vpop.f32.mrf.mxu1  ;;  %v951_v62 = vmul.f32 %v5462_v24, %v854_v46  ;;  %v5512_v46 = vrot.slane %v4971_v36, %v5402_v44 }
 0x155   :  { %v5427_v55 = vpop.f32.mrf.mxu0  ;;  %v953_v0 = vmul.f32 %v5465_v25, %v925_v47  ;;  %v5515_v47 = vrot.slane %v4972_v59, %v5395_v41 }
 0x156   :  { %v927_v56 = vpop.f32.mrf.mxu1  ;;  %v952_v18 = vmul.f32 %v5477_v49, %v5427_v55  ;;  %v955_v30 = vadd.f32 %v951_v62, %v766_v60  ;;  %v5538_v60 = vrot.slane %v4973_v29, %v5395_v41 }
 0x157   :  { %v954_v4 = vmul.f32 %v5474_v35, %v927_v56  ;;  %v767_v56 = vadd.f32 %v763_v37, %v578_v57  ;;  %v957_v31 = vadd.f32 %v953_v0, %v768_v61  ;;  %v5533_v57 = vrot.slane %v4972_v59, %v5402_v44 }
 0x159   :  { %v958_v34 = vadd.f32 %v954_v4, %v769_v2 }
 0x15c   :  { %v1043_v11 = vpop.f32.mrf.mxu0  ;;  %v1114_v12 = vpop.f32.mrf.mxu1 }
 0x15d   :  { %v1140_v32 = vmul.f32 %v5480_v51, %v1043_v11  ;;  %v1142_v33 = vmul.f32 %v5491_v58, %v1114_v12  ;;  %v956_v11 = vadd.f32 %v952_v18, %v767_v56 }
 0x15e   :  { %v1045_v27 = vpop.f32.mrf.mxu0  ;;  %v1116_v28 = vpop.f32.mrf.mxu1 }
 0x15f   :  { %v1141_v55 = vmul.f32 %v5488_v40, %v1045_v27  ;;  %v1143_v36 = vmul.f32 %v5500_v39, %v1116_v28  ;;  %v5543_v27 = vrot.slane %v4973_v29, %v5397_v42  ;;  %v1144_v28 = vadd.f32 %v1140_v32, %v955_v30 }
 0x160   :  { %v1146_v59 = vadd.f32 %v1142_v33, %v957_v31  ;;  %v5553_v42 = vrot.slane %v4973_v29, %v5402_v44 }
 0x161   :  { %6052 = vst [vmem:[#allocation4_spill] sm:$0xff] %v5543_v27  ;;  %v1147_v0 = vadd.f32 %v1143_v36, %v958_v34 }
 0x162   :  { %6054 = vst [vmem:[#allocation6_spill] sm:$0xff] %v5553_v42 }
 0x164   :  { %v1232_v38 = vpop.f32.mrf.mxu0  ;;  %v1303_v43 = vpop.f32.mrf.mxu1 }
 0x165   :  { %v1329_v37 = vmul.f32 %v5503_v13, %v1232_v38  ;;  %v1331_v7 = vmul.f32 %v5506_v16, %v1303_v43  ;;  %v1145_v43 = vadd.f32 %v1141_v55, %v956_v11 }
 0x166   :  { %v1234_v14 = vpop.f32.mrf.mxu0  ;;  %v1305_v15 = vpop.f32.mrf.mxu1 }
 0x167   :  { %v1330_v12 = vmul.f32 %v5509_v17, %v1234_v14  ;;  %v1332_v61 = vmul.f32 %v5512_v46, %v1305_v15  ;;  %v1333_v4 = vadd.f32 %v1329_v37, %v1144_v28  ;;  %v1335_v56 = vadd.f32 %v1331_v7, %v1146_v59 }
 0x168   :  { %v5550_v14 = vrot.slane %v4973_v29, %v5404_v45  ;;  %v1721_v29 = vpop.permute.xlu1 %1720 }
 0x169   :  { %v1334_v15 = vadd.f32 %v1330_v12, %v1145_v43  ;;  %v1336_v18 = vadd.f32 %v1332_v61, %v1147_v0 }
 0x16a   :  { %6053 = vst [vmem:[#allocation5_spill] sm:$0xff] %v5550_v14 }
 0x16c   :  { %v1421_v19 = vpop.f32.mrf.mxu0  ;;  %v1492_v22 = vpop.f32.mrf.mxu1 }
 0x16d   :  { %v1518_v62 = vmul.f32 %v5515_v47, %v1421_v19  ;;  %v1520_v38 = vmul.f32 %v5520_v23, %v1492_v22 }
 0x16e   :  { %v1423_v6 = vpop.f32.mrf.mxu0  ;;  %v1494_v3 = vpop.f32.mrf.mxu1 }
 0x16f   :  { %v1519_v2 = vmul.f32 %v5523_v26, %v1423_v6  ;;  %v1521_v41 = vmul.f32 %v5533_v57, %v1494_v3  ;;  %v1522_v31 = vadd.f32 %v1518_v62, %v1333_v4  ;;  %v1524_v22 = vadd.f32 %v1520_v38, %v1335_v56  ;;  %v1729_v4 = vld [vmem:[%s6031_s5] sm:$0xf] }
 0x170   :  { %v6056_v56 = vmov 0  }
 0x171   :  { %v1523_v33 = vadd.f32 %v1519_v2, %v1334_v15  ;;  %v1525_v3 = vadd.f32 %v1521_v41, %v1336_v18  ;;  %v5000_v2 = vld [vmem:[%s6030_s4 + $0x10] sm:$0xf]  ;;  %v6055_v41 = vmov 0.0  }
 0x174   :  { %v1610_v30 = vpop.f32.mrf.mxu0  ;;  %v1681_v19 = vpop.f32.mrf.mxu1 }
 0x175   :  { %v1707_v32 = vmul.f32 %v5538_v60, %v1610_v30  ;;  %v1709_v6 = vmul.f32 %v5543_v27, %v1681_v19 }
 0x176   :  { %v1612_v34 = vpop.f32.mrf.mxu0  ;;  %v1683_v7 = vpop.f32.mrf.mxu1 }
 0x177   :  { %v1711_v55 = vadd.f32 %v1707_v32, %v1522_v31  ;;  %v1713_v45 = vadd.f32 %v1709_v6, %v1524_v22  ;;  %v1708_v36 = vmul.f32 %v5550_v14, %v1612_v34  ;;  %v1710_v44 = vmul.f32 %v5553_v42, %v1683_v7  ;;  %v1906_v22 = vld [vmem:[%s6030_s4] sm:$0xf] }
 0x179   :  { %v1715_v37 = vmax.f32 %v1711_v55, 0.0  ;;  %v1712_v11 = vadd.f32 %v1708_v36, %v1523_v33  ;;  %v1714_v12 = vadd.f32 %v1710_v44, %v1525_v3  ;;  %v1717_v61 = vmax.f32 %v1713_v45, 0.0  ;;  %v5013_v36 = vld [vmem:[%s6030_s4 + $0x4] sm:$0xf] }
 0x17b   :  { %v1716_v28 = vmax.f32 %v1712_v11, 0.0  ;;  %v1718_v59 = vmax.f32 %v1714_v12, 0.0  ;;  %v1723_v62 = vadd.f32 %v1721_v29, %v1715_v37  ;;  %v1725_v0 = vadd.f32 %v1721_v29, %v1717_v61 }
 0x17d   :  { %v1724_v38 = vadd.f32 %v1721_v29, %v1716_v28  ;;  %v1726_v43 = vadd.f32 %v1721_v29, %v1718_v59  ;;  %1894 = vrot.lane.b32.xlu1 %v1723_v62, %s5145_s11 }
 0x17f   :  { %5004 = vmatprep.subr.msk.mxu1 %vm1739_vm9, %v1726_v43  ;;  %1896 = vrot.lane.b32.xlu0 %v1724_v38, %s5145_s11 }
 0x180   :  { %5001 = vmatprep.subr.msk.mxu0 %vm1739_vm9, %v1724_v38  ;;  %5005 = vmatpush1.msk.msra.mxu1 %vm1739_vm9, %v1725_v0 }
 0x181   :  { %5002 = vmatpush1.msk.msra.mxu0 %vm1739_vm9, %v1723_v62  ;;  %1898 = vrot.lane.b32.xlu1 %v1725_v0, %s5145_s11 }
 0x182   :  { %5003 = vmatmul.mubr.msk.f32.vlgmr.msra.gmra.mxu0 %vm1735_vm10, %v5000_v2  ;;  %5006 = vmatmul.mubr.msk.f32.vlgmr.msra.gmra.mxu1 %vm1735_vm10, %v5000_v2 }
 0x183   :  { %1900 = vrot.lane.b32.xlu0 %v1726_v43, %s5145_s11  ;;  %1986 = vmatprep.mubr.f32.mxu0 %v6055_v41 }
 0x184   :  { %2057 = vmatprep.mubr.f32.mxu1 %v6055_v41 }
 0x185   :  { %2072 = vrot.lane.b32.xlu1 %v1723_v62, %s5146_s0 }
 0x187   :  { %2074 = vrot.lane.b32.xlu0 %v1724_v38, %s5146_s0 }
 0x189   :  { %2076 = vrot.lane.b32.xlu1 %v1725_v0, %s5146_s0 }
 0x18b   :  { %2078 = vrot.lane.b32.xlu0 %v1726_v43, %s5146_s0 }
 0x18d   :  { %2251 = vrot.lane.b32.xlu1 %v1723_v62, %s5147_s16 }
 0x18f   :  { %2253 = vrot.lane.b32.xlu0 %v1724_v38, %s5147_s16 }
 0x191   :  { %2255 = vrot.lane.b32.xlu1 %v1725_v0, %s5147_s16 }
 0x193   :  { %2257 = vrot.lane.b32.xlu0 %v1726_v43, %s5147_s16 }
 0x195   :  { %2430 = vrot.lane.b32.xlu1 %v1723_v62, %s5148_s17 }
 0x197   :  { %2432 = vrot.lane.b32.xlu0 %v1724_v38, %s5148_s17 }
 0x199   :  { %2434 = vrot.lane.b32.xlu1 %v1725_v0, %s5148_s17 }
 0x19b   :  { %2436 = vrot.lane.b32.xlu0 %v1726_v43, %s5148_s17 }
 0x19d   :  { %2609 = vrot.lane.b32.xlu1 %v1723_v62, %s5149_s18 }
 0x19f   :  { %2611 = vrot.lane.b32.xlu0 %v1724_v38, %s5149_s18 }
 0x1a1   :  { %2613 = vrot.lane.b32.xlu1 %v1725_v0, %s5149_s18 }
 0x1a3   :  { %2615 = vrot.lane.b32.xlu0 %v1726_v43, %s5149_s18 }
 0x1a5   :  { %2788 = vrot.lane.b32.xlu1 %v1723_v62, %s5150_s19 }
 0x1a7   :  { %2790 = vrot.lane.b32.xlu0 %v1724_v38, %s5150_s19 }
 0x1a9   :  { %2792 = vrot.lane.b32.xlu1 %v1725_v0, %s5150_s19 }
 0x1ab   :  { %2794 = vrot.lane.b32.xlu0 %v1726_v43, %s5150_s19 }
 0x1ad   :  { %2967 = vrot.lane.b32.xlu1 %v1723_v62, %s5151_s20 }
 0x1af   :  { %2969 = vrot.lane.b32.xlu0 %v1724_v38, %s5151_s20 }
 0x1b1   :  { %2971 = vrot.lane.b32.xlu1 %v1725_v0, %s5151_s20 }
 0x1b3   :  { %2973 = vrot.lane.b32.xlu0 %v1726_v43, %s5151_s20 }
 0x1b5   :  { %3146 = vrot.lane.b32.xlu1 %v1723_v62, %s5154_s21  ;;  %v5020_v62 = vld [vmem:[%s6030_s4 + $0x8] sm:$0xf] }
 0x1b7   :  { %3148 = vrot.lane.b32.xlu0 %v1724_v38, %s5154_s21 }
 0x1b9   :  { %3150 = vrot.lane.b32.xlu1 %v1725_v0, %s5154_s21 }
 0x1bb   :  { %3152 = vrot.lane.b32.xlu0 %v1726_v43, %s5154_s21 }
 0x1bd   :  { %1732 = vperm.xlu1 %5138, %v1729_v4  }
 0x1bf   :  { %3330 = vperm.xlu0 %5139, %v1729_v4  }
 0x1c3   :  { %5140 = vset.pattern.permute.xlu0 %v6056_v56 }
 0x1ef   :  { %v1895_v15 = vpop.permute.xlu1 %1894 }
 0x1f1   :  { %v1897_v18 = vpop.permute.xlu0 %1896 }
 0x1f2   :  { %v1904_v30 = vsel %vm212_vm1, %v1895_v15, %v1897_v18 }
 0x1f3   :  { %v1899_v19 = vpop.permute.xlu1 %1898  ;;  %5007 = vmatprep.subr.msk.mxu0 %vm1739_vm9, %v1904_v30  ;;  %v5027_v30 = vld [vmem:[%s6030_s4 + $0xc] sm:$0xf] }
 0x1f4   :  { %v1903_v33 = vsel %vm212_vm1, %v1897_v18, %v1899_v19 }
 0x1f5   :  { %v1901_v31 = vpop.permute.xlu0 %1900 }
 0x1f6   :  { %v1902_v32 = vsel %vm212_vm1, %v1899_v19, %v1901_v31  ;;  %v1905_v6 = vsel %vm212_vm1, %v1901_v31, %v1895_v15 }
 0x1f7   :  { %5010 = vmatprep.subr.msk.mxu1 %vm1739_vm9, %v1902_v32  ;;  %v2073_v3 = vpop.permute.xlu1 %2072  ;;  %5008 = vmatpush1.msk.msra.mxu0 %vm1739_vm9, %v1905_v6 }
 0x1f8   :  { %5011 = vmatpush1.msk.msra.mxu1 %vm1739_vm9, %v1903_v33  ;;  %5009 = vmatmul.mubr.msk.f32.vlgmr.msra.gmra.mxu0 %vm1735_vm10, %v1906_v22 }
 0x1f9   :  { %v2075_v34 = vpop.permute.xlu0 %2074  ;;  %5012 = vmatmul.mubr.msk.f32.vlgmr.msra.gmra.mxu1 %vm1735_vm10, %v1906_v22  ;;  %2165 = vmatprep.mubr.f32.mxu0 %v6055_v41 }
 0x1fa   :  { %v2082_v7 = vsel %vm400_vm2, %v2073_v3, %v2075_v34  ;;  %2236 = vmatprep.mubr.f32.mxu1 %v6055_v41 }
 0x1fb   :  { %v2077_v55 = vpop.permute.xlu1 %2076  ;;  %5014 = vmatprep.subr.msk.mxu0 %vm1739_vm9, %v2082_v7 }
 0x1fc   :  { %v2081_v37 = vsel %vm400_vm2, %v2075_v34, %v2077_v55  ;;  %v5034_v34 = vld [vmem:[%s6030_s4 + $0x14] sm:$0xf] }
 0x1fd   :  { %v2079_v45 = vpop.permute.xlu0 %2078 }
 0x1fe   :  { %v2080_v44 = vsel %vm400_vm2, %v2077_v55, %v2079_v45  ;;  %v2083_v29 = vsel %vm400_vm2, %v2079_v45, %v2073_v3 }
 0x1ff   :  { %5017 = vmatprep.subr.msk.mxu1 %vm1739_vm9, %v2080_v44  ;;  %v2252_v11 = vpop.permute.xlu1 %2251  ;;  %5015 = vmatpush1.msk.msra.mxu0 %vm1739_vm9, %v2083_v29 }
 0x200   :  { %5018 = vmatpush1.msk.msra.mxu1 %vm1739_vm9, %v2081_v37  ;;  %5016 = vmatmul.mubr.msk.f32.vlgmr.msra.gmra.mxu0 %vm1735_vm10, %v5013_v36 }
 0x201   :  { %v2254_v12 = vpop.permute.xlu0 %2253  ;;  %5019 = vmatmul.mubr.msk.f32.vlgmr.msra.gmra.mxu1 %vm1735_vm10, %v5013_v36  ;;  %2344 = vmatprep.mubr.f32.mxu0 %v6055_v41 }
 0x202   :  { %v2261_v61 = vsel %vm589_vm3, %v2252_v11, %v2254_v12  ;;  %2415 = vmatprep.mubr.f32.mxu1 %v6055_v41 }
 0x203   :  { %v2256_v28 = vpop.permute.xlu1 %2255  ;;  %5021 = vmatprep.subr.msk.mxu0 %vm1739_vm9, %v2261_v61 }
 0x204   :  { %v2260_v0 = vsel %vm589_vm3, %v2254_v12, %v2256_v28  ;;  %v5041_v12 = vld [vmem:[%s6030_s4 + $0x18] sm:$0xf] }
 0x205   :  { %v2258_v59 = vpop.permute.xlu0 %2257 }
 0x206   :  { %v2259_v38 = vsel %vm589_vm3, %v2256_v28, %v2258_v59  ;;  %v2262_v43 = vsel %vm589_vm3, %v2258_v59, %v2252_v11 }
 0x207   :  { %5024 = vmatprep.subr.msk.mxu1 %vm1739_vm9, %v2259_v38  ;;  %v2431_v2 = vpop.permute.xlu1 %2430  ;;  %5022 = vmatpush1.msk.msra.mxu0 %vm1739_vm9, %v2262_v43 }
 0x208   :  { %5025 = vmatpush1.msk.msra.mxu1 %vm1739_vm9, %v2260_v0  ;;  %5023 = vmatmul.mubr.msk.f32.vlgmr.msra.gmra.mxu0 %vm1735_vm10, %v5020_v62 }
 0x209   :  { %v2433_v4 = vpop.permute.xlu0 %2432  ;;  %5026 = vmatmul.mubr.msk.f32.vlgmr.msra.gmra.mxu1 %vm1735_vm10, %v5020_v62  ;;  %2523 = vmatprep.mubr.f32.mxu0 %v6055_v41 }
 0x20a   :  { %v2440_v56 = vsel %vm778_vm4, %v2431_v2, %v2433_v4  ;;  %2594 = vmatprep.mubr.f32.mxu1 %v6055_v41 }
 0x20b   :  { %v2435_v15 = vpop.permute.xlu1 %2434  ;;  %5028 = vmatprep.subr.msk.mxu0 %vm1739_vm9, %v2440_v56 }
 0x20c   :  { %v2439_v22 = vsel %vm778_vm4, %v2433_v4, %v2435_v15  ;;  %v5048_v4 = vld [vmem:[%s6030_s4 + $0x1c] sm:$0xf] }
 0x20d   :  { %v2437_v18 = vpop.permute.xlu0 %2436 }
 0x20e   :  { %v2438_v19 = vsel %vm778_vm4, %v2435_v15, %v2437_v18  ;;  %v2441_v31 = vsel %vm778_vm4, %v2437_v18, %v2431_v2 }
 0x20f   :  { %5031 = vmatprep.subr.msk.mxu1 %vm1739_vm9, %v2438_v19  ;;  %v2610_v32 = vpop.permute.xlu1 %2609  ;;  %5029 = vmatpush1.msk.msra.mxu0 %vm1739_vm9, %v2441_v31 }
 0x210   :  { %5032 = vmatpush1.msk.msra.mxu1 %vm1739_vm9, %v2439_v22  ;;  %5030 = vmatmul.mubr.msk.f32.vlgmr.msra.gmra.mxu0 %vm1735_vm10, %v5027_v30 }
 0x211   :  { %v2612_v6 = vpop.permute.xlu0 %2611  ;;  %2702 = vmatprep.mubr.f32.mxu0 %v6055_v41  ;;  %5033 = vmatmul.mubr.msk.f32.vlgmr.msra.gmra.mxu1 %vm1735_vm10, %v5027_v30 }
 0x212   :  { %2773 = vmatprep.mubr.f32.mxu1 %v6055_v41  ;;  %v2619_v7 = vsel %vm967_vm5, %v2610_v32, %v2612_v6 }
 0x213   :  { %v2614_v33 = vpop.permute.xlu1 %2613 }
 0x214   :  { %v2618_v3 = vsel %vm967_vm5, %v2612_v6, %v2614_v33  ;;  %v5055_v6 = vld [vmem:[%s6030_s4 + $0x20] sm:$0xf] }
 0x215   :  { %v2616_v55 = vpop.permute.xlu0 %2615  ;;  %5035 = vmatprep.subr.msk.mxu0 %vm1739_vm9, %v2618_v3 }
 0x216   :  { %v2617_v45 = vsel %vm967_vm5, %v2614_v33, %v2616_v55  ;;  %v2620_v36 = vsel %vm967_vm5, %v2616_v55, %v2610_v32  ;;  %5036 = vmatpush1.msk.msra.mxu0 %vm1739_vm9, %v2619_v7 }
 0x217   :  { %5038 = vmatprep.subr.msk.mxu1 %vm1739_vm9, %v2620_v36  ;;  %v2789_v44 = vpop.permute.xlu1 %2788  ;;  %5037 = vmatmul.mubr.msk.f32.vlgmr.msra.gmra.mxu0 %vm1735_vm10, %v5034_v34 }
 0x218   :  { %5039 = vmatpush1.msk.msra.mxu1 %vm1739_vm9, %v2617_v45  ;;  %2881 = vmatprep.mubr.f32.mxu0 %v6055_v41 }
 0x219   :  { %v2791_v29 = vpop.permute.xlu0 %2790  ;;  %5040 = vmatmul.mubr.msk.f32.vlgmr.msra.gmra.mxu1 %vm1735_vm10, %v5034_v34 }
 0x21a   :  { %2952 = vmatprep.mubr.f32.mxu1 %v6055_v41  ;;  %v2798_v61 = vsel %vm1156_vm6, %v2789_v44, %v2791_v29 }
 0x21b   :  { %v2793_v37 = vpop.permute.xlu1 %2792 }
 0x21c   :  { %v2797_v11 = vsel %vm1156_vm6, %v2791_v29, %v2793_v37 }
 0x21d   :  { %v2795_v28 = vpop.permute.xlu0 %2794  ;;  %5042 = vmatprep.subr.msk.mxu0 %vm1739_vm9, %v2797_v11 }
 0x21e   :  { %v2796_v59 = vsel %vm1156_vm6, %v2793_v37, %v2795_v28  ;;  %v2799_v62 = vsel %vm1156_vm6, %v2795_v28, %v2789_v44  ;;  %5043 = vmatpush1.msk.msra.mxu0 %vm1739_vm9, %v2798_v61 }
 0x21f   :  { %5045 = vmatprep.subr.msk.mxu1 %vm1739_vm9, %v2799_v62  ;;  %v2968_v38 = vpop.permute.xlu1 %2967  ;;  %5044 = vmatmul.mubr.msk.f32.vlgmr.msra.gmra.mxu0 %vm1735_vm10, %v5041_v12 }
 0x220   :  { %5046 = vmatpush1.msk.msra.mxu1 %vm1739_vm9, %v2796_v59  ;;  %3060 = vmatprep.mubr.f32.mxu0 %v6055_v41 }
 0x221   :  { %v2970_v43 = vpop.permute.xlu0 %2969  ;;  %5047 = vmatmul.mubr.msk.f32.vlgmr.msra.gmra.mxu1 %vm1735_vm10, %v5041_v12 }
 0x222   :  { %3131 = vmatprep.mubr.f32.mxu1 %v6055_v41  ;;  %v2977_v56 = vsel %vm1345_vm7, %v2968_v38, %v2970_v43 }
 0x223   :  { %v2972_v0 = vpop.permute.xlu1 %2971 }
 0x224   :  { %v2976_v2 = vsel %vm1345_vm7, %v2970_v43, %v2972_v0 }
 0x225   :  { %v2974_v15 = vpop.permute.xlu0 %2973  ;;  %5049 = vmatprep.subr.msk.mxu0 %vm1739_vm9, %v2976_v2 }
 0x226   :  { %v2975_v18 = vsel %vm1345_vm7, %v2972_v0, %v2974_v15  ;;  %v2978_v30 = vsel %vm1345_vm7, %v2974_v15, %v2968_v38  ;;  %5050 = vmatpush1.msk.msra.mxu0 %vm1739_vm9, %v2977_v56 }
 0x227   :  { %5052 = vmatprep.subr.msk.mxu1 %vm1739_vm9, %v2978_v30  ;;  %v3147_v19 = vpop.permute.xlu1 %3146  ;;  %5051 = vmatmul.mubr.msk.f32.vlgmr.msra.gmra.mxu0 %vm1735_vm10, %v5048_v4 }
 0x228   :  { %5053 = vmatpush1.msk.msra.mxu1 %vm1739_vm9, %v2975_v18  ;;  %3239 = vmatprep.mubr.f32.mxu0 %v6055_v41 }
 0x229   :  { %v3149_v31 = vpop.permute.xlu0 %3148  ;;  %5054 = vmatmul.mubr.msk.f32.vlgmr.msra.gmra.mxu1 %vm1735_vm10, %v5048_v4 }
 0x22a   :  { %3310 = vmatprep.mubr.f32.mxu1 %v6055_v41  ;;  %v3156_v33 = vsel %vm1534_vm8, %v3147_v19, %v3149_v31 }
 0x22b   :  { %v3151_v22 = vpop.permute.xlu1 %3150 }
 0x22c   :  { %v3155_v32 = vsel %vm1534_vm8, %v3149_v31, %v3151_v22 }
 0x22d   :  { %v3153_v3 = vpop.permute.xlu0 %3152  ;;  %5056 = vmatprep.subr.msk.mxu0 %vm1739_vm9, %v3155_v32 }
 0x22e   :  { %v3154_v34 = vsel %vm1534_vm8, %v3151_v22, %v3153_v3  ;;  %v3157_v7 = vsel %vm1534_vm8, %v3153_v3, %v3147_v19  ;;  %5057 = vmatpush1.msk.msra.mxu0 %vm1739_vm9, %v3156_v33 }
 0x22f   :  { %5058 = vmatmul.mubr.msk.f32.vlgmr.msra.gmra.mxu0 %vm1735_vm10, %v5055_v6  ;;  %5059 = vmatprep.subr.msk.mxu1 %vm1739_vm9, %v3157_v7 }
 0x230   :  { %5060 = vmatpush1.msk.msra.mxu1 %vm1739_vm9, %v3154_v34  ;;  %3424 = vmatprep.mubr.f32.mxu0 %v6055_v41 }
 0x231   :  { %5061 = vmatmul.mubr.msk.f32.vlgmr.msra.gmra.mxu1 %vm1735_vm10, %v5055_v6 }
 0x232   :  { %3495 = vmatprep.mubr.f32.mxu1 %v6055_v41 }
 0x238   :  { %v1733_v56 = vpop.permute.xlu1 %1732 }
 0x242   :  { %v1818_v55 = vpop.f32.mrf.mxu0  ;;  %v1889_v45 = vpop.f32.mrf.mxu1 }
 0x243   :  { %v1819_v19 = vadd.f32 %v1818_v55, %v1733_v56  ;;  %v1890_v32 = vadd.f32 %v1889_v45, %v1733_v56 }
 0x244   :  { %v1820_v36 = vpop.f32.mrf.mxu0  ;;  %v1891_v44 = vpop.f32.mrf.mxu1 }
 0x245   :  { %v1821_v3 = vadd.f32 %v1820_v36, %v1733_v56  ;;  %v1892_v34 = vadd.f32 %v1891_v44, %v1733_v56 }
 0x2b8   :  { %v1988_v29 = vpop.f32.mrf.mxu0 }
 0x2b9   :  { %v2059_v37 = vpop.f32.mrf.mxu1  ;;  %v2064_v30 = vmul.f32 %v1988_v29, %v5407_v48 }
 0x2ba   :  { %v1990_v11 = vpop.f32.mrf.mxu0  ;;  %v2066_v22 = vmul.f32 %v2059_v37, %v5410_v9 }
 0x2bb   :  { %v2061_v12 = vpop.f32.mrf.mxu1  ;;  %v2065_v6 = vmul.f32 %v1990_v11, %v5419_v52  ;;  %v2068_v41 = vadd.f32 %v2064_v30, %v1819_v19 }
 0x2bc   :  { %v2067_v33 = vmul.f32 %v2061_v12, %v5416_v50  ;;  %v2070_v14 = vadd.f32 %v2066_v22, %v1890_v32 }
 0x2bd   :  { %v2069_v45 = vadd.f32 %v2065_v6, %v1821_v3 }
 0x2be   :  { %v2071_v29 = vadd.f32 %v2067_v33, %v1892_v34 }
 0x2c0   :  { %v2167_v61 = vpop.f32.mrf.mxu0 }
 0x2c1   :  { %v2238_v28 = vpop.f32.mrf.mxu1  ;;  %v2243_v10 = vmul.f32 %v2167_v61, %v5422_v53 }
 0x2c2   :  { %v2169_v59 = vpop.f32.mrf.mxu0  ;;  %v2245_v27 = vmul.f32 %v2238_v28, %v5425_v54 }
 0x2c3   :  { %v2240_v62 = vpop.f32.mrf.mxu1  ;;  %v2244_v55 = vmul.f32 %v2169_v59, %v5439_v1  ;;  %v2247_v11 = vadd.f32 %v2243_v10, %v2068_v41 }
 0x2c4   :  { %v2246_v37 = vmul.f32 %v2240_v62, %v5436_v63  ;;  %v2249_v56 = vadd.f32 %v2245_v27, %v2070_v14 }
 0x2c5   :  { %v2248_v19 = vadd.f32 %v2244_v55, %v2069_v45 }
 0x2c6   :  { %v2250_v30 = vadd.f32 %v2246_v37, %v2071_v29 }
 0x2c8   :  { %v2346_v38 = vpop.f32.mrf.mxu0 }
 0x2c9   :  { %v2417_v43 = vpop.f32.mrf.mxu1  ;;  %v2422_v12 = vmul.f32 %v2346_v38, %v5443_v5 }
 0x2ca   :  { %v2348_v0 = vpop.f32.mrf.mxu0  ;;  %v2424_v61 = vmul.f32 %v2417_v43, %v5446_v8 }
 0x2cb   :  { %v2419_v2 = vpop.f32.mrf.mxu1  ;;  %v2423_v28 = vmul.f32 %v2348_v0, %v5458_v21  ;;  %v2426_v32 = vadd.f32 %v2422_v12, %v2247_v11 }
 0x2cc   :  { %v2425_v22 = vmul.f32 %v2419_v2, %v5455_v20  ;;  %v2428_v33 = vadd.f32 %v2424_v61, %v2249_v56 }
 0x2cd   :  { %v2427_v41 = vadd.f32 %v2423_v28, %v2248_v19 }
 0x2ce   :  { %v2429_v38 = vadd.f32 %v2425_v22, %v2250_v30 }
 0x2d0   :  { %v2525_v4 = vpop.f32.mrf.mxu0 }
 0x2d1   :  { %v2596_v15 = vpop.f32.mrf.mxu1  ;;  %v2601_v62 = vmul.f32 %v2525_v4, %v5462_v24 }
 0x2d2   :  { %v2527_v18 = vpop.f32.mrf.mxu0  ;;  %v2603_v10 = vmul.f32 %v2596_v15, %v5465_v25 }
 0x2d3   :  { %v2598_v31 = vpop.f32.mrf.mxu1  ;;  %v2602_v27 = vmul.f32 %v2527_v18, %v5477_v49  ;;  %v2605_v34 = vadd.f32 %v2601_v62, %v2426_v32 }
 0x2d4   :  { %v2604_v14 = vmul.f32 %v2598_v31, %v5474_v35  ;;  %v2607_v29 = vadd.f32 %v2603_v10, %v2428_v33 }
 0x2d5   :  { %v2606_v45 = vadd.f32 %v2602_v27, %v2427_v41 }
 0x2d6   :  { %v2608_v11 = vadd.f32 %v2604_v14, %v2429_v38 }
 0x2d7   :  { %v2704_v7 = vpop.f32.mrf.mxu0 }
 0x2d8   :  { %v2780_v0 = vmul.f32 %v2704_v7, %v5480_v51 }
 0x2d9   :  { %v2775_v42 = vpop.f32.mrf.mxu1  ;;  %v2706_v9 = vpop.f32.mrf.mxu0 }
 0x2da   :  { %v2781_v2 = vmul.f32 %v2706_v9, %v5488_v40  ;;  %v2782_v4 = vmul.f32 %v2775_v42, %v5491_v58  ;;  %v2784_v12 = vadd.f32 %v2780_v0, %v2605_v34  ;;  %v6058_v0 = vld [vmem:[#allocation4_spill] sm:$0xff] }
 0x2db   :  { %v2777_v36 = vpop.f32.mrf.mxu1 }
 0x2dc   :  { %v2783_v18 = vmul.f32 %v2777_v36, %v5500_v39  ;;  %v2785_v9 = vadd.f32 %v2781_v2, %v2606_v45  ;;  %v2786_v19 = vadd.f32 %v2782_v4, %v2607_v29  ;;  %v3331_v4 = vpop.permute.xlu0 %3330 }
 0x2de   :  { %v2787_v22 = vadd.f32 %v2783_v18, %v2608_v11  ;;  %v6059_v11 = vld [vmem:[#allocation6_spill] sm:$0xff] }
 0x2df   :  { %v2883_v44 = vpop.f32.mrf.mxu0 }
 0x2e0   :  { %v2959_v37 = vmul.f32 %v2883_v44, %v5503_v13 }
 0x2e1   :  { %v2954_v59 = vpop.f32.mrf.mxu1  ;;  %v2885_v6 = vpop.f32.mrf.mxu0 }
 0x2e2   :  { %v2960_v31 = vmul.f32 %v2885_v6, %v5509_v17  ;;  %v2961_v56 = vmul.f32 %v2954_v59, %v5506_v16  ;;  %v2963_v44 = vadd.f32 %v2959_v37, %v2784_v12 }
 0x2e3   :  { %v2956_v43 = vpop.f32.mrf.mxu1 }
 0x2e4   :  { %v2962_v30 = vmul.f32 %v2956_v43, %v5512_v46  ;;  %v2964_v32 = vadd.f32 %v2960_v31, %v2785_v9  ;;  %v2965_v6 = vadd.f32 %v2961_v56, %v2786_v19  ;;  %v5062_v19 = vld [vmem:[%s6032_s6 + $0x10] sm:$0xf] }
 0x2e6   :  { %v2966_v10 = vadd.f32 %v2962_v30, %v2787_v22  ;;  %v3339_v22 = vld [vmem:[%s6033_s7] sm:$0xf] }
 0x2e7   :  { %v3062_v3 = vpop.f32.mrf.mxu0 }
 0x2e8   :  { %v3138_v7 = vmul.f32 %v3062_v3, %v5515_v47  ;;  %v6057_v3 = vld [vmem:[#allocation5_spill] sm:$0xff] }
 0x2e9   :  { %v3133_v55 = vpop.f32.mrf.mxu1  ;;  %v3064_v15 = vpop.f32.mrf.mxu0 }
 0x2ea   :  { %v3139_v42 = vmul.f32 %v3064_v15, %v5523_v26  ;;  %v3140_v28 = vmul.f32 %v3133_v55, %v5520_v23  ;;  %v3142_v33 = vadd.f32 %v3138_v7, %v2963_v44  ;;  %v6060_v44 = vmov 0.0  }
 0x2eb   :  { %v3135_v61 = vpop.f32.mrf.mxu1 }
 0x2ec   :  { %v3141_v36 = vmul.f32 %v3135_v61, %v5533_v57  ;;  %v3143_v41 = vadd.f32 %v3139_v42, %v2964_v32  ;;  %v3144_v14 = vadd.f32 %v3140_v28, %v2965_v6  ;;  %v5155_v28 = vmov 1  }
 0x2ed   :  { %5141 = vset.pattern.permute.xlu1 %v5155_v28  ;;  %v6061_v32 = vmov 2  }
 0x2ee   :  { %v3145_v55 = vadd.f32 %v3141_v36, %v2966_v10 }
 0x2ef   :  { %v3241_v62 = vpop.f32.mrf.mxu0 }
 0x2f0   :  { %v3317_v59 = vmul.f32 %v3241_v62, %v5538_v60 }
 0x2f1   :  { %v3243_v38 = vpop.f32.mrf.mxu0  ;;  %v3312_v27 = vpop.f32.mrf.mxu1 }
 0x2f2   :  { %v3321_v43 = vadd.f32 %v3317_v59, %v3142_v33  ;;  %v3318_v34 = vmul.f32 %v3243_v38, %v6057_v3  ;;  %v3319_v2 = vmul.f32 %v3312_v27, %v6058_v0  ;;  %v3514_v38 = vld [vmem:[%s6032_s6] sm:$0xf] }
 0x2f3   :  { %v3314_v29 = vpop.f32.mrf.mxu1 }
 0x2f4   :  { %v3325_v37 = vmax.f32 %v3321_v43, 0.0  ;;  %v3322_v15 = vadd.f32 %v3318_v34, %v3143_v41  ;;  %v3323_v45 = vadd.f32 %v3319_v2, %v3144_v14  ;;  %v3320_v18 = vmul.f32 %v3314_v29, %v6059_v11 }
 0x2f6   :  { %v3326_v31 = vmax.f32 %v3322_v15, 0.0  ;;  %v3327_v12 = vmax.f32 %v3323_v45, 0.0  ;;  %v3324_v56 = vadd.f32 %v3320_v18, %v3145_v55  ;;  %v3333_v7 = vadd.f32 %v3331_v4, %v3325_v37  ;;  %v5075_v37 = vld [vmem:[%s6032_s6 + $0x4] sm:$0xf] }
 0x2f8   :  { %v3328_v61 = vmax.f32 %v3324_v56, 0.0  ;;  %v3334_v9 = vadd.f32 %v3331_v4, %v3326_v31  ;;  %v3335_v30 = vadd.f32 %v3331_v4, %v3327_v12  ;;  %3502 = vrot.lane.b32.xlu1 %v3333_v7, %s5145_s11 }
 0x2fa   :  { %v3336_v42 = vadd.f32 %v3331_v4, %v3328_v61  ;;  %3506 = vrot.lane.b32.xlu0 %v3335_v30, %s5145_s11  ;;  %5063 = vmatprep.subr.msk.mxu0 %vm1739_vm9, %v3334_v9 }
 0x2fb   :  { %5064 = vmatpush1.msk.msra.mxu0 %vm1739_vm9, %v3333_v7 }
 0x2fc   :  { %5066 = vmatprep.subr.msk.mxu1 %vm1739_vm9, %v3336_v42  ;;  %3504 = vrot.lane.b32.xlu1 %v3334_v9, %s5145_s11 }
 0x2fd   :  { %5067 = vmatpush1.msk.msra.mxu1 %vm1739_vm9, %v3335_v30  ;;  %5065 = vmatmul.mubr.msk.f32.vlgmr.msra.gmra.mxu0 %vm1735_vm10, %v5062_v19 }
 0x2fe   :  { %3680 = vrot.lane.b32.xlu0 %v3333_v7, %s5146_s0  ;;  %5068 = vmatmul.mubr.msk.f32.vlgmr.msra.gmra.mxu1 %vm1735_vm10, %v5062_v19 }
 0x2ff   :  { %3594 = vmatprep.mubr.f32.mxu0 %v6060_v44  ;;  %3665 = vmatprep.mubr.f32.mxu1 %v6060_v44 }
 0x300   :  { %3508 = vrot.lane.b32.xlu1 %v3336_v42, %s5145_s11 }
 0x302   :  { %3684 = vrot.lane.b32.xlu0 %v3335_v30, %s5146_s0 }
 0x304   :  { %3682 = vrot.lane.b32.xlu1 %v3334_v9, %s5146_s0 }
 0x306   :  { %3859 = vrot.lane.b32.xlu0 %v3333_v7, %s5147_s16 }
 0x308   :  { %3686 = vrot.lane.b32.xlu1 %v3336_v42, %s5146_s0 }
 0x30a   :  { %3863 = vrot.lane.b32.xlu0 %v3335_v30, %s5147_s16 }
 0x30c   :  { %3861 = vrot.lane.b32.xlu1 %v3334_v9, %s5147_s16 }
 0x30e   :  { %4038 = vrot.lane.b32.xlu0 %v3333_v7, %s5148_s17 }
 0x310   :  { %3865 = vrot.lane.b32.xlu1 %v3336_v42, %s5147_s16 }
 0x312   :  { %4042 = vrot.lane.b32.xlu0 %v3335_v30, %s5148_s17 }
 0x314   :  { %4040 = vrot.lane.b32.xlu1 %v3334_v9, %s5148_s17 }
 0x316   :  { %4217 = vrot.lane.b32.xlu0 %v3333_v7, %s5149_s18 }
 0x318   :  { %4044 = vrot.lane.b32.xlu1 %v3336_v42, %s5148_s17 }
 0x31a   :  { %4221 = vrot.lane.b32.xlu0 %v3335_v30, %s5149_s18 }
 0x31c   :  { %4219 = vrot.lane.b32.xlu1 %v3334_v9, %s5149_s18 }
 0x31e   :  { %4396 = vrot.lane.b32.xlu0 %v3333_v7, %s5150_s19 }
 0x320   :  { %4223 = vrot.lane.b32.xlu1 %v3336_v42, %s5149_s18 }
 0x322   :  { %4400 = vrot.lane.b32.xlu0 %v3335_v30, %s5150_s19 }
 0x324   :  { %4398 = vrot.lane.b32.xlu1 %v3334_v9, %s5150_s19 }
 0x326   :  { %4575 = vrot.lane.b32.xlu0 %v3333_v7, %s5151_s20 }
 0x328   :  { %4402 = vrot.lane.b32.xlu1 %v3336_v42, %s5150_s19 }
 0x32a   :  { %4579 = vrot.lane.b32.xlu0 %v3335_v30, %s5151_s20 }
 0x32c   :  { %4577 = vrot.lane.b32.xlu1 %v3334_v9, %s5151_s20 }
 0x32e   :  { %4754 = vrot.lane.b32.xlu0 %v3333_v7, %s5154_s21 }
 0x330   :  { %4581 = vrot.lane.b32.xlu1 %v3336_v42, %s5151_s20 }
 0x332   :  { %4758 = vrot.lane.b32.xlu0 %v3335_v30, %s5154_s21 }
 0x334   :  { %4756 = vrot.lane.b32.xlu1 %v3334_v9, %s5154_s21  ;;  %v5082_v9 = vld [vmem:[%s6032_s6 + $0x8] sm:$0xf] }
 0x336   :  { %3342 = vperm.xlu0 %5140, %v3339_v22  }
 0x338   :  { %4760 = vrot.lane.b32.xlu1 %v3336_v42, %s5154_s21 }
 0x33a   :  { %5143 = vset.pattern.permute.xlu0 %v6061_v32 }
 0x33c   :  { %4938 = vperm.xlu1 %5141, %v3339_v22  }
 0x340   :  { %5142 = vset.pattern.permute.xlu1 %v6061_v32 }
 0x341   :  { %4946 = vperm.xlu1 %5142, %v3339_v22  }
 0x36a   :  { %v3503_v36 = vpop.permute.xlu1 %3502 }
 0x36c   :  { %v3507_v62 = vpop.permute.xlu0 %3506 }
 0x36e   :  { %v3505_v6 = vpop.permute.xlu1 %3504 }
 0x36f   :  { %v3512_v59 = vsel %vm212_vm1, %v3503_v36, %v3505_v6  ;;  %v3511_v43 = vsel %vm212_vm1, %v3505_v6, %v3507_v62  ;;  %v5089_v6 = vld [vmem:[%s6032_s6 + $0xc] sm:$0xf] }
 0x370   :  { %v3681_v10 = vpop.permute.xlu0 %3680  ;;  %5069 = vmatprep.subr.msk.mxu0 %vm1739_vm9, %v3512_v59 }
 0x372   :  { %v3509_v41 = vpop.permute.xlu1 %3508 }
 0x373   :  { %v3510_v27 = vsel %vm212_vm1, %v3507_v62, %v3509_v41  ;;  %v3513_v14 = vsel %vm212_vm1, %v3509_v41, %v3503_v36 }
 0x374   :  { %v3685_v34 = vpop.permute.xlu0 %3684  ;;  %5070 = vmatpush1.msk.msra.mxu0 %vm1739_vm9, %v3513_v14  ;;  %5072 = vmatprep.subr.msk.mxu1 %vm1739_vm9, %v3510_v27 }
 0x375   :  { %5073 = vmatpush1.msk.msra.mxu1 %vm1739_vm9, %v3511_v43  ;;  %5071 = vmatmul.mubr.msk.f32.vlgmr.msra.gmra.mxu0 %vm1735_vm10, %v3514_v38 }
 0x376   :  { %v3683_v2 = vpop.permute.xlu1 %3682  ;;  %5074 = vmatmul.mubr.msk.f32.vlgmr.msra.gmra.mxu1 %vm1735_vm10, %v3514_v38  ;;  %3773 = vmatprep.mubr.f32.mxu0 %v6060_v44 }
 0x377   :  { %v3690_v55 = vsel %vm400_vm2, %v3681_v10, %v3683_v2  ;;  %3844 = vmatprep.mubr.f32.mxu1 %v6060_v44  ;;  %v3689_v18 = vsel %vm400_vm2, %v3683_v2, %v3685_v34 }
 0x378   :  { %v3860_v29 = vpop.permute.xlu0 %3859  ;;  %5076 = vmatprep.subr.msk.mxu0 %vm1739_vm9, %v3690_v55 }
 0x37a   :  { %v3687_v4 = vpop.permute.xlu1 %3686 }
 0x37b   :  { %v3688_v15 = vsel %vm400_vm2, %v3685_v34, %v3687_v4  ;;  %v3691_v45 = vsel %vm400_vm2, %v3687_v4, %v3681_v10  ;;  %v5096_v34 = vld [vmem:[%s6032_s6 + $0x14] sm:$0xf] }
 0x37c   :  { %v3864_v31 = vpop.permute.xlu0 %3863  ;;  %5077 = vmatpush1.msk.msra.mxu0 %vm1739_vm9, %v3691_v45  ;;  %5079 = vmatprep.subr.msk.mxu1 %vm1739_vm9, %v3688_v15 }
 0x37d   :  { %5080 = vmatpush1.msk.msra.mxu1 %vm1739_vm9, %v3689_v18  ;;  %5078 = vmatmul.mubr.msk.f32.vlgmr.msra.gmra.mxu0 %vm1735_vm10, %v5075_v37 }
 0x37e   :  { %v3862_v12 = vpop.permute.xlu1 %3861  ;;  %5081 = vmatmul.mubr.msk.f32.vlgmr.msra.gmra.mxu1 %vm1735_vm10, %v5075_v37  ;;  %3952 = vmatprep.mubr.f32.mxu0 %v6060_v44 }
 0x37f   :  { %v3869_v56 = vsel %vm589_vm3, %v3860_v29, %v3862_v12  ;;  %4023 = vmatprep.mubr.f32.mxu1 %v6060_v44  ;;  %v3868_v19 = vsel %vm589_vm3, %v3862_v12, %v3864_v31 }
 0x380   :  { %v4039_v7 = vpop.permute.xlu0 %4038  ;;  %5083 = vmatprep.subr.msk.mxu0 %vm1739_vm9, %v3869_v56 }
 0x382   :  { %v3866_v61 = vpop.permute.xlu1 %3865 }
 0x383   :  { %v3867_v30 = vsel %vm589_vm3, %v3864_v31, %v3866_v61  ;;  %v3870_v42 = vsel %vm589_vm3, %v3866_v61, %v3860_v29  ;;  %v5103_v31 = vld [vmem:[%s6032_s6 + $0x18] sm:$0xf] }
 0x384   :  { %v4043_v28 = vpop.permute.xlu0 %4042  ;;  %5084 = vmatpush1.msk.msra.mxu0 %vm1739_vm9, %v3870_v42  ;;  %5086 = vmatprep.subr.msk.mxu1 %vm1739_vm9, %v3867_v30 }
 0x385   :  { %5087 = vmatpush1.msk.msra.mxu1 %vm1739_vm9, %v3868_v19  ;;  %5085 = vmatmul.mubr.msk.f32.vlgmr.msra.gmra.mxu0 %vm1735_vm10, %v5082_v9 }
 0x386   :  { %v4041_v22 = vpop.permute.xlu1 %4040  ;;  %5088 = vmatmul.mubr.msk.f32.vlgmr.msra.gmra.mxu1 %vm1735_vm10, %v5082_v9  ;;  %4131 = vmatprep.mubr.f32.mxu0 %v6060_v44 }
 0x387   :  { %v4048_v32 = vsel %vm778_vm4, %v4039_v7, %v4041_v22  ;;  %4202 = vmatprep.mubr.f32.mxu1 %v6060_v44  ;;  %v4047_v41 = vsel %vm778_vm4, %v4041_v22, %v4043_v28 }
 0x388   :  { %v4218_v36 = vpop.permute.xlu0 %4217  ;;  %5090 = vmatprep.subr.msk.mxu0 %vm1739_vm9, %v4048_v32 }
 0x38a   :  { %v4045_v62 = vpop.permute.xlu1 %4044 }
 0x38b   :  { %v4046_v59 = vsel %vm778_vm4, %v4043_v28, %v4045_v62  ;;  %v4049_v10 = vsel %vm778_vm4, %v4045_v62, %v4039_v7  ;;  %v5110_v28 = vld [vmem:[%s6032_s6 + $0x1c] sm:$0xf] }
 0x38c   :  { %v4222_v38 = vpop.permute.xlu0 %4221  ;;  %5091 = vmatpush1.msk.msra.mxu0 %vm1739_vm9, %v4049_v10  ;;  %5093 = vmatprep.subr.msk.mxu1 %vm1739_vm9, %v4046_v59 }
 0x38d   :  { %5094 = vmatpush1.msk.msra.mxu1 %vm1739_vm9, %v4047_v41  ;;  %5092 = vmatmul.mubr.msk.f32.vlgmr.msra.gmra.mxu0 %vm1735_vm10, %v5089_v6 }
 0x38e   :  { %v4220_v27 = vpop.permute.xlu1 %4219  ;;  %5095 = vmatmul.mubr.msk.f32.vlgmr.msra.gmra.mxu1 %vm1735_vm10, %v5089_v6  ;;  %4310 = vmatprep.mubr.f32.mxu0 %v6060_v44 }
 0x38f   :  { %v4226_v14 = vsel %vm967_vm5, %v4220_v27, %v4222_v38  ;;  %v4227_v43 = vsel %vm967_vm5, %v4218_v36, %v4220_v27  ;;  %4381 = vmatprep.mubr.f32.mxu1 %v6060_v44 }
 0x390   :  { %v4397_v2 = vpop.permute.xlu0 %4396  ;;  %5097 = vmatprep.subr.msk.mxu0 %vm1739_vm9, %v4226_v14 }
 0x391   :  { %5098 = vmatpush1.msk.msra.mxu0 %vm1739_vm9, %v4227_v43 }
 0x392   :  { %v4224_v55 = vpop.permute.xlu1 %4223  ;;  %5099 = vmatmul.mubr.msk.f32.vlgmr.msra.gmra.mxu0 %vm1735_vm10, %v5096_v34 }
 0x393   :  { %v4225_v29 = vsel %vm967_vm5, %v4222_v38, %v4224_v55  ;;  %v4228_v4 = vsel %vm967_vm5, %v4224_v55, %v4218_v36  ;;  %4489 = vmatprep.mubr.f32.mxu0 %v6060_v44  ;;  %v5117_v38 = vld [vmem:[%s6032_s6 + $0x20] sm:$0xf] }
 0x394   :  { %v4401_v37 = vpop.permute.xlu0 %4400  ;;  %5100 = vmatprep.subr.msk.mxu1 %vm1739_vm9, %v4228_v4 }
 0x395   :  { %5101 = vmatpush1.msk.msra.mxu1 %vm1739_vm9, %v4225_v29 }
 0x396   :  { %v4399_v15 = vpop.permute.xlu1 %4398  ;;  %5102 = vmatmul.mubr.msk.f32.vlgmr.msra.gmra.mxu1 %vm1735_vm10, %v5096_v34 }
 0x397   :  { %v4405_v45 = vsel %vm1156_vm6, %v4399_v15, %v4401_v37  ;;  %v4406_v18 = vsel %vm1156_vm6, %v4397_v2, %v4399_v15  ;;  %4560 = vmatprep.mubr.f32.mxu1 %v6060_v44 }
 0x398   :  { %v4576_v12 = vpop.permute.xlu0 %4575  ;;  %5104 = vmatprep.subr.msk.mxu0 %vm1739_vm9, %v4405_v45 }
 0x399   :  { %5105 = vmatpush1.msk.msra.mxu0 %vm1739_vm9, %v4406_v18 }
 0x39a   :  { %v4403_v56 = vpop.permute.xlu1 %4402  ;;  %5106 = vmatmul.mubr.msk.f32.vlgmr.msra.gmra.mxu0 %vm1735_vm10, %v5103_v31 }
 0x39b   :  { %v4404_v7 = vsel %vm1156_vm6, %v4401_v37, %v4403_v56  ;;  %v4407_v61 = vsel %vm1156_vm6, %v4403_v56, %v4397_v2  ;;  %4668 = vmatprep.mubr.f32.mxu0 %v6060_v44 }
 0x39c   :  { %v4580_v9 = vpop.permute.xlu0 %4579  ;;  %5107 = vmatprep.subr.msk.mxu1 %vm1739_vm9, %v4407_v61 }
 0x39d   :  { %5108 = vmatpush1.msk.msra.mxu1 %vm1739_vm9, %v4404_v7 }
 0x39e   :  { %5109 = vmatmul.mubr.msk.f32.vlgmr.msra.gmra.mxu1 %vm1735_vm10, %v5103_v31  ;;  %v4578_v30 = vpop.permute.xlu1 %4577 }
 0x39f   :  { %v4584_v42 = vsel %vm1345_vm7, %v4578_v30, %v4580_v9  ;;  %v4585_v19 = vsel %vm1345_vm7, %v4576_v12, %v4578_v30  ;;  %4739 = vmatprep.mubr.f32.mxu1 %v6060_v44 }
 0x3a0   :  { %v4755_v22 = vpop.permute.xlu0 %4754  ;;  %5111 = vmatprep.subr.msk.mxu0 %vm1739_vm9, %v4584_v42 }
 0x3a1   :  { %5112 = vmatpush1.msk.msra.mxu0 %vm1739_vm9, %v4585_v19 }
 0x3a2   :  { %v4582_v32 = vpop.permute.xlu1 %4581  ;;  %5113 = vmatmul.mubr.msk.f32.vlgmr.msra.gmra.mxu0 %vm1735_vm10, %v5110_v28 }
 0x3a3   :  { %v4583_v36 = vsel %vm1345_vm7, %v4580_v9, %v4582_v32  ;;  %v4586_v62 = vsel %vm1345_vm7, %v4582_v32, %v4576_v12  ;;  %4847 = vmatprep.mubr.f32.mxu0 %v6060_v44 }
 0x3a4   :  { %5114 = vmatprep.subr.msk.mxu1 %vm1739_vm9, %v4586_v62  ;;  %v4759_v6 = vpop.permute.xlu0 %4758  ;;  %v6063_v62 = vld [vmem:[#allocation3_spill] sm:$0xff] }
 0x3a5   :  { %5115 = vmatpush1.msk.msra.mxu1 %vm1739_vm9, %v4583_v36 }
 0x3a6   :  { %5116 = vmatmul.mubr.msk.f32.vlgmr.msra.gmra.mxu1 %vm1735_vm10, %v5110_v28  ;;  %v4757_v59 = vpop.permute.xlu1 %4756 }
 0x3a7   :  { %v4763_v10 = vsel %vm1534_vm8, %v4757_v59, %v4759_v6  ;;  %v4764_v41 = vsel %vm1534_vm8, %v4755_v22, %v4757_v59  ;;  %4918 = vmatprep.mubr.f32.mxu1 %v6060_v44 }
 0x3a8   :  { %5118 = vmatprep.subr.msk.mxu0 %vm1739_vm9, %v4763_v10 }
 0x3a9   :  { %5119 = vmatpush1.msk.msra.mxu0 %vm1739_vm9, %v4764_v41 }
 0x3aa   :  { %v4761_v27 = vpop.permute.xlu1 %4760  ;;  %5120 = vmatmul.mubr.msk.f32.vlgmr.msra.gmra.mxu0 %vm1735_vm10, %v5117_v38 }
 0x3ab   :  { %v4762_v14 = vsel %vm1534_vm8, %v4759_v6, %v4761_v27  ;;  %v4765_v43 = vsel %vm1534_vm8, %v4761_v27, %v4755_v22 }
 0x3ac   :  { %5121 = vmatprep.subr.msk.mxu1 %vm1739_vm9, %v4765_v43 }
 0x3ad   :  { %5122 = vmatpush1.msk.msra.mxu1 %vm1739_vm9, %v4762_v14 }
 0x3ae   :  { %5123 = vmatmul.mubr.msk.f32.vlgmr.msra.gmra.mxu1 %vm1735_vm10, %v5117_v38 }
 0x3b1   :  { %v3343_v30 = vpop.permute.xlu0 %3342 }
 0x3bd   :  { %v3426_v44 = vpop.f32.mrf.mxu0 }
 0x3be   :  { %v3497_v34 = vpop.f32.mrf.mxu1  ;;  %v3427_v22 = vadd.f32 %v3426_v44, %v3343_v30 }
 0x3bf   :  { %v3428_v2 = vpop.f32.mrf.mxu0  ;;  %v3498_v59 = vadd.f32 %v3497_v34, %v3343_v30 }
 0x3c0   :  { %v3499_v55 = vpop.f32.mrf.mxu1  ;;  %v3429_v36 = vadd.f32 %v3428_v2, %v3343_v30 }
 0x435   :  { %v3596_v29 = vpop.f32.mrf.mxu0 }
 0x436   :  { %v3667_v4 = vpop.f32.mrf.mxu1  ;;  %v3672_v28 = vmul.f32 %v3596_v29, %v5407_v48  ;;  %v3500_v48 = vadd.f32 %v3499_v55, %v3343_v30 }
 0x437   :  { %v3598_v37 = vpop.f32.mrf.mxu0  ;;  %v3674_v6 = vmul.f32 %v3667_v4, %v6063_v62 }
 0x438   :  { %v3669_v15 = vpop.f32.mrf.mxu1  ;;  %v3673_v32 = vmul.f32 %v3598_v37, %v5419_v52  ;;  %v3676_v27 = vadd.f32 %v3672_v28, %v3427_v22 }
 0x439   :  { %v3675_v11 = vmul.f32 %v3669_v15, %v5416_v50  ;;  %v3678_v44 = vadd.f32 %v3674_v6, %v3498_v59 }
 0x43a   :  { %v3677_v43 = vadd.f32 %v3673_v32, %v3429_v36 }
 0x43d   :  { %v3775_v45 = vpop.f32.mrf.mxu0 }
 0x43e   :  { %v3846_v18 = vpop.f32.mrf.mxu1  ;;  %v3851_v38 = vmul.f32 %v3775_v45, %v5422_v53  ;;  %v3679_v45 = vadd.f32 %v3675_v11, %v3500_v48  ;;  %v4939_v48 = vpop.permute.xlu1 %4938 }
 0x43f   :  { %v3777_v31 = vpop.f32.mrf.mxu0  ;;  %v3853_v0 = vmul.f32 %v3846_v18, %v5425_v54 }
 0x440   :  { %v3848_v12 = vpop.f32.mrf.mxu1  ;;  %v3852_v14 = vmul.f32 %v3777_v31, %v5439_v1  ;;  %v3855_v4 = vadd.f32 %v3851_v38, %v3676_v27 }
 0x441   :  { %v3854_v53 = vmul.f32 %v3848_v12, %v5436_v63  ;;  %v3857_v31 = vadd.f32 %v3853_v0, %v3678_v44 }
 0x442   :  { %v3856_v62 = vadd.f32 %v3852_v14, %v3677_v43 }
 0x445   :  { %v3954_v33 = vpop.f32.mrf.mxu0 }
 0x446   :  { %v4025_v56 = vpop.f32.mrf.mxu1  ;;  %v4030_v2 = vmul.f32 %v3954_v33, %v5443_v5  ;;  %v3858_v33 = vadd.f32 %v3854_v53, %v3679_v45  ;;  %v6065_v45 = vld [vmem:[#allocation6_spill] sm:$0xff] }
 0x447   :  { %v3956_v7 = vpop.f32.mrf.mxu0  ;;  %v4032_v1 = vmul.f32 %v4025_v56, %v5446_v8 }
 0x448   :  { %v4027_v61 = vpop.f32.mrf.mxu1  ;;  %v4031_v37 = vmul.f32 %v3956_v7, %v5458_v21  ;;  %v4034_v15 = vadd.f32 %v4030_v2, %v3855_v4 }
 0x449   :  { %v4033_v28 = vmul.f32 %v4027_v61, %v5455_v20  ;;  %v4036_v21 = vadd.f32 %v4032_v1, %v3857_v31 }
 0x44a   :  { %v4035_v30 = vadd.f32 %v4031_v37, %v3856_v62  ;;  %v6064_v37 = vld [vmem:[#allocation4_spill] sm:$0xff] }
 0x44d   :  { %v4133_v9 = vpop.f32.mrf.mxu0 }
 0x44e   :  { %v4204_v42 = vpop.f32.mrf.mxu1  ;;  %v4209_v54 = vmul.f32 %v4133_v9, %v5462_v24  ;;  %v4037_v9 = vadd.f32 %v4033_v28, %v3858_v33 }
 0x44f   :  { %v4135_v19 = vpop.f32.mrf.mxu0  ;;  %v4211_v7 = vmul.f32 %v4204_v42, %v5465_v25 }
 0x450   :  { %v4206_v10 = vpop.f32.mrf.mxu1  ;;  %v4210_v5 = vmul.f32 %v4135_v19, %v5477_v49  ;;  %v4213_v12 = vadd.f32 %v4209_v54, %v4034_v15 }
 0x451   :  { %v4215_v22 = vadd.f32 %v4211_v7, %v4036_v21  ;;  %v4212_v49 = vmul.f32 %v4206_v10, %v5474_v35 }
 0x452   :  { %v4312_v41 = vpop.f32.mrf.mxu0  ;;  %v4214_v11 = vadd.f32 %v4210_v5, %v4035_v30 }
 0x453   :  { %v4388_v8 = vmul.f32 %v4312_v41, %v5480_v51  ;;  %v4216_v41 = vadd.f32 %v4212_v49, %v4037_v9 }
 0x454   :  { %v4314_v52 = vpop.f32.mrf.mxu0 }
 0x455   :  { %v4389_v56 = vmul.f32 %v4314_v52, %v5488_v40  ;;  %v4392_v32 = vadd.f32 %v4388_v8, %v4213_v12 }
 0x456   :  { %v4383_v29 = vpop.f32.mrf.mxu1 }
 0x457   :  { %v4390_v19 = vmul.f32 %v4383_v29, %v5491_v58  ;;  %v4393_v36 = vadd.f32 %v4389_v56, %v4214_v11 }
 0x458   :  { %v4385_v50 = vpop.f32.mrf.mxu1 }
 0x459   :  { %v4391_v51 = vmul.f32 %v4385_v50, %v5500_v39  ;;  %v4394_v35 = vadd.f32 %v4390_v19, %v4215_v22  ;;  %v4947_v50 = vpop.permute.xlu1 %4946 }
 0x45a   :  { %v4491_v34 = vpop.f32.mrf.mxu0 }
 0x45b   :  { %v4567_v24 = vmul.f32 %v4491_v34, %v5503_v13  ;;  %v4395_v14 = vadd.f32 %v4391_v51, %v4216_v41 }
 0x45c   :  { %v4493_v55 = vpop.f32.mrf.mxu0 }
 0x45d   :  { %v4568_v25 = vmul.f32 %v4493_v55, %v5509_v17  ;;  %v4571_v6 = vadd.f32 %v4567_v24, %v4392_v32 }
 0x45e   :  { %v4562_v18 = vpop.f32.mrf.mxu1 }
 0x45f   :  { %v4569_v40 = vmul.f32 %v4562_v18, %v5506_v16  ;;  %v4572_v38 = vadd.f32 %v4568_v25, %v4393_v36 }
 0x460   :  { %v4564_v0 = vpop.f32.mrf.mxu1 }
 0x461   :  { %v4570_v58 = vmul.f32 %v4564_v0, %v5512_v46  ;;  %v4573_v16 = vadd.f32 %v4569_v40, %v4394_v35 }
 0x462   :  { %v4670_v63 = vpop.f32.mrf.mxu0 }
 0x463   :  { %v4746_v42 = vmul.f32 %v4670_v63, %v5515_v47  ;;  %v4574_v52 = vadd.f32 %v4570_v58, %v4395_v14 }
 0x464   :  { %v4672_v20 = vpop.f32.mrf.mxu0 }
 0x465   :  { %v4747_v13 = vmul.f32 %v4672_v20, %v5523_v26  ;;  %v4750_v27 = vadd.f32 %v4746_v42, %v4571_v6 }
 0x466   :  { %v4741_v61 = vpop.f32.mrf.mxu1 }
 0x467   :  { %v4748_v17 = vmul.f32 %v4741_v61, %v5520_v23  ;;  %v4751_v44 = vadd.f32 %v4747_v13, %v4572_v38 }
 0x468   :  { %v4743_v59 = vpop.f32.mrf.mxu1 }
 0x469   :  { %v4749_v39 = vmul.f32 %v4743_v59, %v5533_v57  ;;  %v4752_v46 = vadd.f32 %v4748_v17, %v4573_v16 }
 0x46a   :  { %v4849_v10 = vpop.f32.mrf.mxu0 }
 0x46b   :  { %v4925_v47 = vmul.f32 %v4849_v10, %v5538_v60  ;;  %v4753_v23 = vadd.f32 %v4749_v39, %v4574_v52 }
 0x46c   :  { %v4851_v43 = vpop.f32.mrf.mxu0 }
 0x46d   :  { %v4929_v26 = vadd.f32 %v4925_v47, %v4750_v27  ;;  %v4926_v29 = vmul.f32 %v4851_v43, %v6057_v3 }
 0x46e   :  { %v4920_v2 = vpop.f32.mrf.mxu1 }
 0x46f   :  { %v4933_v4 = vmax.f32 %v4929_v26, 0.0  ;;  %v4930_v34 = vadd.f32 %v4926_v29, %v4751_v44  ;;  %v4927_v62 = vmul.f32 %v4920_v2, %v6064_v37 }
 0x470   :  { %v4922_v53 = vpop.f32.mrf.mxu1 }
 0x471   :  { %v4934_v60 = vmax.f32 %v4930_v34, 0.0  ;;  %v4931_v1 = vadd.f32 %v4927_v62, %v4752_v46  ;;  %v4928_v57 = vmul.f32 %v4922_v53, %v6065_v45  ;;  %v4941_v31 = vmul.f32 %v4939_v48, %v4933_v4 }
 0x473   :  { %v4935_v15 = vmax.f32 %v4931_v1, 0.0  ;;  %v4932_v54 = vadd.f32 %v4928_v57, %v4753_v23  ;;  %v4942_v55 = vmul.f32 %v4939_v48, %v4934_v60  ;;  %v4949_v30 = vadd.f32 %v4947_v50, %v4941_v31 }
 0x475   :  { %v4936_v18 = vmax.f32 %v4932_v54, 0.0  ;;  %v4943_v3 = vmul.f32 %v4939_v48, %v4935_v15  ;;  %v4950_v5 = vadd.f32 %v4947_v50, %v4942_v55 }
 0x477   :  { %v4944_v33 = vmul.f32 %v4939_v48, %v4936_v18  ;;  %v4957_v28 = vcombine.low %v4949_v30, %v4950_v5  ;;  %v4951_v21 = vadd.f32 %v4947_v50, %v4943_v3 }
 0x479   :  { %v4952_v7 = vadd.f32 %v4947_v50, %v4944_v33  ;;  %4961 = vst [vmem:[%s6034_s8] sm:$0xff] %v4957_v28 }
 0x47b   :  { %v4958_v63 = vcombine.low %v4951_v21, %v4952_v7 }
 0x47d   :  { %4962 = vst [vmem:[%s6034_s8 + $0x8] sm:$0xff] %v4958_v63 }

</bundles_post_ra>
